<compile_context>
chip_gen: v6e
topology: v6e:2x2x1
jax: 0.10.0
libtpu: 0.0.40
codegen_flags: <defaults>
</compile_context>

<pallas_src>
import functools

import jax
import jax.numpy as jnp
from jax.experimental import pallas as pl
from jax.experimental.pallas import tpu as pltpu

_LANE = 128       # pad the tiny (N, 3) prediction to a lane-dense 128-wide slab
_SUB = 8          # sublane granularity (row alignment for W-slab slices)
_NEG_BIG = -1e30  # additive softmax mask (self-loops guarantee >=1 valid entry/row)


def _round_up(v, m):
    return (v + m - 1) // m * m


# ---------------------------------------------------------------------------
# Fused kernel: all GAT layers + final Linear in one body, VMEM/vreg-resident.
# ---------------------------------------------------------------------------
def _rna3d_fused_kernel(x_ref, adjb_ref, w_ref, a_ref, b_ref, pw_ref, pb_ref,
                        out_ref, *, nlayers, nheads, f_out, f_in0_pad,
                        negative_slope):
    HF = nheads * f_out
    N = adjb_ref.shape[0]

    adj_bias = adjb_ref[...]          # (N, N) additive mask, loaded once, reused
    biases = b_ref[...]               # (nlayers, HF), loaded once
    act = x_ref[...]                  # (N, f_in0_pad) current activations (a value)

    w_row = 0
    for layer in range(nlayers):      # static unroll over layers
        f_in = f_in0_pad if layer == 0 else HF
        w = w_ref[w_row:w_row + f_in, :]                 # (f_in, HF) static slice
        w_row += f_in
        a_bd = a_ref[layer * HF:(layer + 1) * HF, :]     # (HF, 2H) block-diag att

        # One MXU matmul for all heads: (N, F_in) @ (F_in, H*F_out).
        # TODO(synk): cast operands to bf16 (f32 accumulation) once N/F grow.
        xp = jnp.dot(act, w, preferred_element_type=jnp.float32)      # (N, HF)

        # Per-head attention coefficients for ALL heads via one small MXU matmul:
        # column h of a_all == <xp_h, att_src_h>, column H+h == <xp_h, att_dst_h>.
        a_all = jnp.dot(xp, a_bd, preferred_element_type=jnp.float32)  # (N, 2H)
        a_src_t = a_all[:, :nheads].T                    # (H, N) one tiny transpose
        a_dst_t = a_all[:, nheads:].T                    # (H, N)

        # Stacked logits for all heads: logits[h, d, s] = a_dst[d,h] + a_src[s,h].
        logits = a_dst_t[:, :, None] + a_src_t[:, None, :]             # (H, N, N)
        logits = jnp.maximum(logits, negative_slope * logits)          # leaky_relu
        masked = logits + adj_bias[None, :, :]                         # mask: 1 add
        m = jnp.max(masked, axis=-1, keepdims=True)
        p = jnp.exp(masked - m)
        denom = jnp.sum(p, axis=-1, keepdims=True)
        alpha = p * pl.reciprocal(denom, approx=True)                  # EUP divide
        # attention / feature dropout: identity at inference (training=False)

        # Per-head aggregation on the MXU, then ONE full-width bias/relu.
        head_outs = [
            jnp.dot(alpha[h], xp[:, h * f_out:(h + 1) * f_out],
                    preferred_element_type=jnp.float32)
            for h in range(nheads)
        ]
        act = jnp.concatenate(head_outs, axis=-1) + biases[layer:layer + 1, :]
        if layer != nlayers - 1:
            act = jnp.maximum(act, 0.0)                  # F.relu between layers

    # Final Linear head: weights zero-padded to 128 lanes -> unmasked full store.
    out_ref[...] = (jnp.dot(act, pw_ref[...], preferred_element_type=jnp.float32)
                    + pb_ref[...]).astype(out_ref.dtype)


# ---------------------------------------------------------------------------
# Parameter packing into a few flat slabs (done once, outside the hot path)
# ---------------------------------------------------------------------------
def pack_params(params, in_channels):
    convs = params["convs"]
    H, _, F_out = convs[0]["W"].shape
    HF = H * F_out
    nlayers = len(convs)
    f_in0_pad = _round_up(in_channels, _SUB)

    # W slab: all layers' (F_in, H*F_out) stacked along rows (row-pad layer 0 to 8).
    w_chunks = []
    for li, layer in enumerate(convs):
        W = layer["W"]                                       # (H, F_in, F_out)
        f_in = W.shape[1]
        w_all = jnp.transpose(W, (1, 0, 2)).reshape(f_in, HF)
        if li == 0 and f_in < f_in0_pad:
            w_all = jnp.concatenate(
                [w_all, jnp.zeros((f_in0_pad - f_in, HF), jnp.float32)], axis=0)
        w_chunks.append(w_all)
    w_slab = jnp.concatenate(w_chunks, axis=0)

    # Attention slab: per layer a block-diagonal (HF, 2H) matrix; columns [0:H]
    # pick a_src per head, columns [H:2H] pick a_dst per head.
    a_chunks = []
    for layer in convs:
        a_bd = jnp.zeros((HF, 2 * H), jnp.float32)
        asrc = layer["att_src"].reshape(H, F_out)
        adst = layer["att_dst"].reshape(H, F_out)
        for h in range(H):
            a_bd = a_bd.at[h * F_out:(h + 1) * F_out, h].set(asrc[h])
            a_bd = a_bd.at[h * F_out:(h + 1) * F_out, H + h].set(adst[h])
        a_chunks.append(a_bd)
    a_slab = jnp.concatenate(a_chunks, axis=0)               # (nlayers*HF, 2H)

    bias_slab = jnp.stack([l["bias"].reshape(HF) for l in convs], axis=0)

    D, O = params["pred_w"].shape
    pred_w = jnp.zeros((D, _LANE), jnp.float32).at[:, :O].set(params["pred_w"])
    pred_b = jnp.zeros((1, _LANE), jnp.float32).at[0, :O].set(params["pred_b"])

    return {"w_slab": w_slab, "a_slab": a_slab, "bias_slab": bias_slab,
            "pred_w": pred_w, "pred_b": pred_b,
            "nheads": H, "f_out": F_out, "nlayers": nlayers,
            "f_in0_pad": f_in0_pad, "out_dim": O}


# ---------------------------------------------------------------------------
# Forward: a single pallas_call
# ---------------------------------------------------------------------------
def rna3d_forward(x, adj, packed, negative_slope=0.2):
    N, f_in = x.shape
    H, F_out = packed["nheads"], packed["f_out"]
    nlayers = packed["nlayers"]
    HF = H * F_out
    f_in0_pad = packed["f_in0_pad"]

    # Pad input features to the W-slab row count (sublane-aligned static slices).
    if f_in < f_in0_pad:
        x = jnp.concatenate([x, jnp.zeros((N, f_in0_pad - f_in), x.dtype)], -1)

    # Additive softmax mask computed ONCE (not per head / per layer in-kernel).
    # TODO(synk): at large N store adj as int8/bitmask and stream dst-row blocks.
    adj_bias = jnp.where(adj > 0, 0.0, _NEG_BIG).astype(jnp.float32)

    inputs = [x, adj_bias, packed["w_slab"], packed["a_slab"],
              packed["bias_slab"], packed["pred_w"], packed["pred_b"]]
    in_specs = [pl.BlockSpec(a.shape, lambda i: (0, 0)) for a in inputs]  # all 2D

    # Advisory cost estimate so XLA can schedule around the custom call.
    flops = 0
    fi = f_in0_pad
    for _ in range(nlayers):
        flops += 2 * N * fi * HF                     # x @ W_all
        flops += 2 * N * HF * 2 * H                  # attention-coefficient matmul
        flops += H * 2 * N * N * F_out               # alpha @ xp aggregation
        flops += H * 8 * N * N                       # softmax elementwise
        fi = HF
    flops += 2 * N * HF * _LANE                      # padded pred matmul
    transcendentals = nlayers * H * N * N            # exp
    bytes_accessed = sum(int(a.size) * 4 for a in inputs) + N * _LANE * 4

    out_padded = pl.pallas_call(
        functools.partial(_rna3d_fused_kernel, nlayers=nlayers, nheads=H,
                          f_out=F_out, f_in0_pad=f_in0_pad,
                          negative_slope=negative_slope),
        out_shape=jax.ShapeDtypeStruct((N, _LANE), jnp.float32),
        grid_spec=pltpu.PrefetchScalarGridSpec(
            num_scalar_prefetch=0,
            grid=(1,),
            in_specs=in_specs,
            out_specs=pl.BlockSpec((N, _LANE), lambda i: (0, 0)),
            scratch_shapes=[],
        ),
        compiler_params=pltpu.CompilerParams(
            dimension_semantics=("arbitrary",)),
        cost_estimate=pl.CostEstimate(flops=flops,
                                      transcendentals=transcendentals,
                                      bytes_accessed=bytes_accessed),
    )(*inputs)
    return out_padded[:, :packed["out_dim"]]


# ---------------------------------------------------------------------------
# Deterministic parameter / input construction
# ---------------------------------------------------------------------------
def init_params(key, in_channels, hidden_channels, nlayers, nheads):
    convs = []
    f_in = in_channels
    for _ in range(nlayers):
        key, k1, k2, k3, k4 = jax.random.split(key, 5)
        convs.append({
            "W": 0.1 * jax.random.normal(k1, (nheads, f_in, hidden_channels),
                                         jnp.float32),
            "att_src": 0.1 * jax.random.normal(k2, (nheads, 1, hidden_channels),
                                               jnp.float32),
            "att_dst": 0.1 * jax.random.normal(k3, (nheads, 1, hidden_channels),
                                               jnp.float32),
            "bias": 0.1 * jax.random.normal(k4, (nheads, 1, hidden_channels),
                                            jnp.float32),
        })
        f_in = hidden_channels * nheads
    key, kw, kb = jax.random.split(key, 3)
    pred_w = 0.1 * jax.random.normal(kw, (hidden_channels * nheads, 3), jnp.float32)
    pred_b = 0.1 * jax.random.normal(kb, (3,), jnp.float32)
    return {"convs": convs, "pred_w": pred_w, "pred_b": pred_b}


def build_adjacency(edge_index, num_nodes):
    # adj[dst, src] = 1 for each edge src -> dst, plus self-loops (PyG default).
    adj = jnp.zeros((num_nodes, num_nodes), jnp.float32)
    adj = adj.at[edge_index[1], edge_index[0]].set(1.0)
    idx = jnp.arange(num_nodes)
    adj = adj.at[idx, idx].set(1.0)
    return adj


if __name__ == "__main__":
    # Small, deterministic problem: 16 nodes, 8 input feats, 8 hidden, 4 heads.
    N, IN_CH, HID, NLAYERS, NHEADS = 16, 8, 8, 3, 4

    key = jax.random.PRNGKey(0)
    key, kx = jax.random.split(key)
    x = jax.random.normal(kx, (N, IN_CH), jnp.float32)

    # Deterministic edge list (bidirectional chain + a couple of long edges).
    edges = []
    for i in range(N - 1):
        edges.append((i, i + 1))
        edges.append((i + 1, i))
    edges += [(0, N - 1), (N - 1, 0), (0, N // 2), (N // 2, 0)]
    edge_index = jnp.array(edges, dtype=jnp.int32).T          # (2, E) src/dst
    batch = jnp.zeros((N,), jnp.int32)                        # unused in forward

    adj = build_adjacency(edge_index, N)
    # Self-loops must be present so every softmax row has >=1 unmasked entry.
    assert bool(jnp.all(jnp.diag(adj) > 0))

    params = init_params(key, IN_CH, HID, NLAYERS, NHEADS)
    packed = pack_params(params, IN_CH)

    out = rna3d_forward(x, adj, packed)                       # (N, 3)
    jax.block_until_ready(out)
    assert out.shape == (N, 3) and out.dtype == jnp.float32
    assert bool(jnp.all(jnp.isfinite(out)))
    print("KERNEL_OK")
</pallas_src>

<mosaic_0001>
module attributes {stable_mosaic.version = 11 : i64} {
  func.func @_rna3d_fused_kernel(%arg0: i32, %arg1: memref<16x8xf32, #tpu.memory_space<vmem>>, %arg2: memref<16x16xf32, #tpu.memory_space<vmem>>, %arg3: memref<72x32xf32, #tpu.memory_space<vmem>>, %arg4: memref<96x8xf32, #tpu.memory_space<vmem>>, %arg5: memref<3x32xf32, #tpu.memory_space<vmem>>, %arg6: memref<32x128xf32, #tpu.memory_space<vmem>>, %arg7: memref<1x128xf32, #tpu.memory_space<vmem>>, %arg8: memref<16x128xf32, #tpu.memory_space<vmem>>) attributes {dimension_semantics = [#tpu.dimension_semantics<arbitrary>], iteration_bounds = array<i64: 1>, scalar_prefetch = 0 : i64, scratch_operands = 0 : i64, tpu.core_type = #tpu.core_type<tc>, window_params = [{pipeline_mode = #tpu.pipeline_mode<synchronous>, transform_indices = @transform_0, window_bounds = array<i64: 16, 8>}, {pipeline_mode = #tpu.pipeline_mode<synchronous>, transform_indices = @transform_1, window_bounds = array<i64: 16, 16>}, {pipeline_mode = #tpu.pipeline_mode<synchronous>, transform_indices = @transform_2, window_bounds = array<i64: 72, 32>}, {pipeline_mode = #tpu.pipeline_mode<synchronous>, transform_indices = @transform_3, window_bounds = array<i64: 96, 8>}, {pipeline_mode = #tpu.pipeline_mode<synchronous>, transform_indices = @transform_4, window_bounds = array<i64: 3, 32>}, {pipeline_mode = #tpu.pipeline_mode<synchronous>, transform_indices = @transform_5, window_bounds = array<i64: 32, 128>}, {pipeline_mode = #tpu.pipeline_mode<synchronous>, transform_indices = @transform_6, window_bounds = array<i64: 1, 128>}, {pipeline_mode = #tpu.pipeline_mode<synchronous>, transform_indices = @transform_7, window_bounds = array<i64: 16, 128>}]} {
    %c0 = arith.constant 0 : index
    %c0_0 = arith.constant 0 : index
    %0 = vector.load %arg2[%c0, %c0_0] : memref<16x16xf32, #tpu.memory_space<vmem>>, vector<16x16xf32>
    %c0_1 = arith.constant 0 : index
    %c0_2 = arith.constant 0 : index
    %1 = vector.load %arg5[%c0_1, %c0_2] : memref<3x32xf32, #tpu.memory_space<vmem>>, vector<3x32xf32>
    %c0_3 = arith.constant 0 : index
    %c0_4 = arith.constant 0 : index
    %2 = vector.load %arg1[%c0_3, %c0_4] : memref<16x8xf32, #tpu.memory_space<vmem>>, vector<16x8xf32>
    %c0_5 = arith.constant 0 : index
    %c0_6 = arith.constant 0 : index
    %3 = vector.load %arg3[%c0_5, %c0_6] : memref<72x32xf32, #tpu.memory_space<vmem>>, vector<8x32xf32>
    %c0_7 = arith.constant 0 : index
    %c0_8 = arith.constant 0 : index
    %4 = vector.load %arg4[%c0_7, %c0_8] : memref<96x8xf32, #tpu.memory_space<vmem>>, vector<32x8xf32>
    %cst = arith.constant dense<0.000000e+00> : vector<16x32xf32>
    %5 = tpu.matmul %2, %3, %cst {dimension_numbers = #tpu.dot_dimension_numbers<[1], [0], [0], [1], [0, 0, 1, 1], [], []>} : vector<16x8xf32>, vector<8x32xf32>, vector<16x32xf32> -> vector<16x32xf32>
    %cst_9 = arith.constant dense<0.000000e+00> : vector<16x8xf32>
    %6 = tpu.matmul %5, %4, %cst_9 {dimension_numbers = #tpu.dot_dimension_numbers<[1], [0], [0], [1], [0, 0, 1, 1], [], []>} : vector<16x32xf32>, vector<32x8xf32>, vector<16x8xf32> -> vector<16x8xf32>
    %7 = vector.extract_strided_slice %6 {offsets = [0, 0], sizes = [16, 4], strides = [1, 1]} : vector<16x8xf32> to vector<16x4xf32>
    %8 = tpu.transpose %7, [1, 0] : vector<16x4xf32> -> vector<4x16xf32>
    %9 = vector.extract_strided_slice %6 {offsets = [0, 4], sizes = [16, 4], strides = [1, 1]} : vector<16x8xf32> to vector<16x4xf32>
    %10 = tpu.transpose %9, [1, 0] : vector<16x4xf32> -> vector<4x16xf32>
    %11 = vector.shape_cast %10 : vector<4x16xf32> to vector<4x16x1xf32>
    %12 = vector.shape_cast %8 : vector<4x16xf32> to vector<4x1x16xf32>
    %13 = vector.broadcast %11 : vector<4x16x1xf32> to vector<4x16x16xf32>
    %14 = vector.broadcast %12 : vector<4x1x16xf32> to vector<4x16x16xf32>
    %15 = arith.addf %13, %14 : vector<4x16x16xf32>
    %cst_10 = arith.constant 2.000000e-01 : f32
    %16 = vector.broadcast %cst_10 : f32 to vector<4x16x16xf32>
    %17 = arith.mulf %16, %15 : vector<4x16x16xf32>
    %18 = arith.maximumf %15, %17 : vector<4x16x16xf32>
    %19 = vector.shape_cast %0 : vector<16x16xf32> to vector<1x16x16xf32>
    %20 = vector.broadcast %19 : vector<1x16x16xf32> to vector<4x16x16xf32>
    %21 = arith.addf %18, %20 : vector<4x16x16xf32>
    %cst_11 = arith.constant dense<0xFF800000> : vector<4x16xf32>
    %22 = vector.multi_reduction <maximumf>, %21, %cst_11 [2] : vector<4x16x16xf32> to vector<4x16xf32>
    %23 = vector.shape_cast %22 : vector<4x16xf32> to vector<4x16x1xf32>
    %24 = vector.broadcast %23 : vector<4x16x1xf32> to vector<4x16x16xf32>
    %25 = arith.subf %21, %24 : vector<4x16x16xf32>
    %26 = math.exp %25 : vector<4x16x16xf32>
    %cst_12 = arith.constant dense<0.000000e+00> : vector<4x16xf32>
    %27 = vector.multi_reduction <add>, %26, %cst_12 [2] : vector<4x16x16xf32> to vector<4x16xf32>
    %28 = vector.shape_cast %27 : vector<4x16xf32> to vector<4x16x1xf32>
    %29 = tpu.reciprocal %28 {approx = true} : vector<4x16x1xf32> -> vector<4x16x1xf32>
    %30 = vector.broadcast %29 : vector<4x16x1xf32> to vector<4x16x16xf32>
    %31 = arith.mulf %26, %30 : vector<4x16x16xf32>
    %32 = vector.extract_strided_slice %31 {offsets = [0, 0, 0], sizes = [1, 16, 16], strides = [1, 1, 1]} : vector<4x16x16xf32> to vector<1x16x16xf32>
    %33 = vector.shape_cast %32 : vector<1x16x16xf32> to vector<16x16xf32>
    %34 = vector.extract_strided_slice %5 {offsets = [0, 0], sizes = [16, 8], strides = [1, 1]} : vector<16x32xf32> to vector<16x8xf32>
    %cst_13 = arith.constant dense<0.000000e+00> : vector<16x8xf32>
    %35 = tpu.matmul %33, %34, %cst_13 {dimension_numbers = #tpu.dot_dimension_numbers<[1], [0], [0], [1], [0, 0, 1, 1], [], []>} : vector<16x16xf32>, vector<16x8xf32>, vector<16x8xf32> -> vector<16x8xf32>
    %36 = vector.extract_strided_slice %31 {offsets = [1, 0, 0], sizes = [1, 16, 16], strides = [1, 1, 1]} : vector<4x16x16xf32> to vector<1x16x16xf32>
    %37 = vector.shape_cast %36 : vector<1x16x16xf32> to vector<16x16xf32>
    %38 = vector.extract_strided_slice %5 {offsets = [0, 8], sizes = [16, 8], strides = [1, 1]} : vector<16x32xf32> to vector<16x8xf32>
    %cst_14 = arith.constant dense<0.000000e+00> : vector<16x8xf32>
    %39 = tpu.matmul %37, %38, %cst_14 {dimension_numbers = #tpu.dot_dimension_numbers<[1], [0], [0], [1], [0, 0, 1, 1], [], []>} : vector<16x16xf32>, vector<16x8xf32>, vector<16x8xf32> -> vector<16x8xf32>
    %40 = vector.extract_strided_slice %31 {offsets = [2, 0, 0], sizes = [1, 16, 16], strides = [1, 1, 1]} : vector<4x16x16xf32> to vector<1x16x16xf32>
    %41 = vector.shape_cast %40 : vector<1x16x16xf32> to vector<16x16xf32>
    %42 = vector.extract_strided_slice %5 {offsets = [0, 16], sizes = [16, 8], strides = [1, 1]} : vector<16x32xf32> to vector<16x8xf32>
    %cst_15 = arith.constant dense<0.000000e+00> : vector<16x8xf32>
    %43 = tpu.matmul %41, %42, %cst_15 {dimension_numbers = #tpu.dot_dimension_numbers<[1], [0], [0], [1], [0, 0, 1, 1], [], []>} : vector<16x16xf32>, vector<16x8xf32>, vector<16x8xf32> -> vector<16x8xf32>
    %44 = vector.extract_strided_slice %31 {offsets = [3, 0, 0], sizes = [1, 16, 16], strides = [1, 1, 1]} : vector<4x16x16xf32> to vector<1x16x16xf32>
    %45 = vector.shape_cast %44 : vector<1x16x16xf32> to vector<16x16xf32>
    %46 = vector.extract_strided_slice %5 {offsets = [0, 24], sizes = [16, 8], strides = [1, 1]} : vector<16x32xf32> to vector<16x8xf32>
    %cst_16 = arith.constant dense<0.000000e+00> : vector<16x8xf32>
    %47 = tpu.matmul %45, %46, %cst_16 {dimension_numbers = #tpu.dot_dimension_numbers<[1], [0], [0], [1], [0, 0, 1, 1], [], []>} : vector<16x16xf32>, vector<16x8xf32>, vector<16x8xf32> -> vector<16x8xf32>
    %48 = tpu.concatenate %35, %39, %43, %47 in 1 : vector<16x8xf32>, vector<16x8xf32>, vector<16x8xf32>, vector<16x8xf32> -> vector<16x32xf32>
    %49 = vector.extract_strided_slice %1 {offsets = [0, 0], sizes = [1, 32], strides = [1, 1]} : vector<3x32xf32> to vector<1x32xf32>
    %50 = vector.broadcast %49 : vector<1x32xf32> to vector<16x32xf32>
    %51 = arith.addf %48, %50 : vector<16x32xf32>
    %cst_17 = arith.constant 0.000000e+00 : f32
    %52 = vector.broadcast %cst_17 : f32 to vector<16x32xf32>
    %53 = arith.maximumf %51, %52 : vector<16x32xf32>
    %c8 = arith.constant 8 : index
    %c0_18 = arith.constant 0 : index
    %54 = vector.load %arg3[%c8, %c0_18] : memref<72x32xf32, #tpu.memory_space<vmem>>, vector<32x32xf32>
    %c32 = arith.constant 32 : index
    %c0_19 = arith.constant 0 : index
    %55 = vector.load %arg4[%c32, %c0_19] : memref<96x8xf32, #tpu.memory_space<vmem>>, vector<32x8xf32>
    %cst_20 = arith.constant dense<0.000000e+00> : vector<16x32xf32>
    %56 = tpu.matmul %53, %54, %cst_20 {dimension_numbers = #tpu.dot_dimension_numbers<[1], [0], [0], [1], [0, 0, 1, 1], [], []>} : vector<16x32xf32>, vector<32x32xf32>, vector<16x32xf32> -> vector<16x32xf32>
    %cst_21 = arith.constant dense<0.000000e+00> : vector<16x8xf32>
    %57 = tpu.matmul %56, %55, %cst_21 {dimension_numbers = #tpu.dot_dimension_numbers<[1], [0], [0], [1], [0, 0, 1, 1], [], []>} : vector<16x32xf32>, vector<32x8xf32>, vector<16x8xf32> -> vector<16x8xf32>
    %58 = vector.extract_strided_slice %57 {offsets = [0, 0], sizes = [16, 4], strides = [1, 1]} : vector<16x8xf32> to vector<16x4xf32>
    %59 = tpu.transpose %58, [1, 0] : vector<16x4xf32> -> vector<4x16xf32>
    %60 = vector.extract_strided_slice %57 {offsets = [0, 4], sizes = [16, 4], strides = [1, 1]} : vector<16x8xf32> to vector<16x4xf32>
    %61 = tpu.transpose %60, [1, 0] : vector<16x4xf32> -> vector<4x16xf32>
    %62 = vector.shape_cast %61 : vector<4x16xf32> to vector<4x16x1xf32>
    %63 = vector.shape_cast %59 : vector<4x16xf32> to vector<4x1x16xf32>
    %64 = vector.broadcast %62 : vector<4x16x1xf32> to vector<4x16x16xf32>
    %65 = vector.broadcast %63 : vector<4x1x16xf32> to vector<4x16x16xf32>
    %66 = arith.addf %64, %65 : vector<4x16x16xf32>
    %cst_22 = arith.constant 2.000000e-01 : f32
    %67 = vector.broadcast %cst_22 : f32 to vector<4x16x16xf32>
    %68 = arith.mulf %67, %66 : vector<4x16x16xf32>
    %69 = arith.maximumf %66, %68 : vector<4x16x16xf32>
    %70 = vector.shape_cast %0 : vector<16x16xf32> to vector<1x16x16xf32>
    %71 = vector.broadcast %70 : vector<1x16x16xf32> to vector<4x16x16xf32>
    %72 = arith.addf %69, %71 : vector<4x16x16xf32>
    %cst_23 = arith.constant dense<0xFF800000> : vector<4x16xf32>
    %73 = vector.multi_reduction <maximumf>, %72, %cst_23 [2] : vector<4x16x16xf32> to vector<4x16xf32>
    %74 = vector.shape_cast %73 : vector<4x16xf32> to vector<4x16x1xf32>
    %75 = vector.broadcast %74 : vector<4x16x1xf32> to vector<4x16x16xf32>
    %76 = arith.subf %72, %75 : vector<4x16x16xf32>
    %77 = math.exp %76 : vector<4x16x16xf32>
    %cst_24 = arith.constant dense<0.000000e+00> : vector<4x16xf32>
    %78 = vector.multi_reduction <add>, %77, %cst_24 [2] : vector<4x16x16xf32> to vector<4x16xf32>
    %79 = vector.shape_cast %78 : vector<4x16xf32> to vector<4x16x1xf32>
    %80 = tpu.reciprocal %79 {approx = true} : vector<4x16x1xf32> -> vector<4x16x1xf32>
    %81 = vector.broadcast %80 : vector<4x16x1xf32> to vector<4x16x16xf32>
    %82 = arith.mulf %77, %81 : vector<4x16x16xf32>
    %83 = vector.extract_strided_slice %82 {offsets = [0, 0, 0], sizes = [1, 16, 16], strides = [1, 1, 1]} : vector<4x16x16xf32> to vector<1x16x16xf32>
    %84 = vector.shape_cast %83 : vector<1x16x16xf32> to vector<16x16xf32>
    %85 = vector.extract_strided_slice %56 {offsets = [0, 0], sizes = [16, 8], strides = [1, 1]} : vector<16x32xf32> to vector<16x8xf32>
    %cst_25 = arith.constant dense<0.000000e+00> : vector<16x8xf32>
    %86 = tpu.matmul %84, %85, %cst_25 {dimension_numbers = #tpu.dot_dimension_numbers<[1], [0], [0], [1], [0, 0, 1, 1], [], []>} : vector<16x16xf32>, vector<16x8xf32>, vector<16x8xf32> -> vector<16x8xf32>
    %87 = vector.extract_strided_slice %82 {offsets = [1, 0, 0], sizes = [1, 16, 16], strides = [1, 1, 1]} : vector<4x16x16xf32> to vector<1x16x16xf32>
    %88 = vector.shape_cast %87 : vector<1x16x16xf32> to vector<16x16xf32>
    %89 = vector.extract_strided_slice %56 {offsets = [0, 8], sizes = [16, 8], strides = [1, 1]} : vector<16x32xf32> to vector<16x8xf32>
    %cst_26 = arith.constant dense<0.000000e+00> : vector<16x8xf32>
    %90 = tpu.matmul %88, %89, %cst_26 {dimension_numbers = #tpu.dot_dimension_numbers<[1], [0], [0], [1], [0, 0, 1, 1], [], []>} : vector<16x16xf32>, vector<16x8xf32>, vector<16x8xf32> -> vector<16x8xf32>
    %91 = vector.extract_strided_slice %82 {offsets = [2, 0, 0], sizes = [1, 16, 16], strides = [1, 1, 1]} : vector<4x16x16xf32> to vector<1x16x16xf32>
    %92 = vector.shape_cast %91 : vector<1x16x16xf32> to vector<16x16xf32>
    %93 = vector.extract_strided_slice %56 {offsets = [0, 16], sizes = [16, 8], strides = [1, 1]} : vector<16x32xf32> to vector<16x8xf32>
    %cst_27 = arith.constant dense<0.000000e+00> : vector<16x8xf32>
    %94 = tpu.matmul %92, %93, %cst_27 {dimension_numbers = #tpu.dot_dimension_numbers<[1], [0], [0], [1], [0, 0, 1, 1], [], []>} : vector<16x16xf32>, vector<16x8xf32>, vector<16x8xf32> -> vector<16x8xf32>
    %95 = vector.extract_strided_slice %82 {offsets = [3, 0, 0], sizes = [1, 16, 16], strides = [1, 1, 1]} : vector<4x16x16xf32> to vector<1x16x16xf32>
    %96 = vector.shape_cast %95 : vector<1x16x16xf32> to vector<16x16xf32>
    %97 = vector.extract_strided_slice %56 {offsets = [0, 24], sizes = [16, 8], strides = [1, 1]} : vector<16x32xf32> to vector<16x8xf32>
    %cst_28 = arith.constant dense<0.000000e+00> : vector<16x8xf32>
    %98 = tpu.matmul %96, %97, %cst_28 {dimension_numbers = #tpu.dot_dimension_numbers<[1], [0], [0], [1], [0, 0, 1, 1], [], []>} : vector<16x16xf32>, vector<16x8xf32>, vector<16x8xf32> -> vector<16x8xf32>
    %99 = tpu.concatenate %86, %90, %94, %98 in 1 : vector<16x8xf32>, vector<16x8xf32>, vector<16x8xf32>, vector<16x8xf32> -> vector<16x32xf32>
    %100 = vector.extract_strided_slice %1 {offsets = [1, 0], sizes = [1, 32], strides = [1, 1]} : vector<3x32xf32> to vector<1x32xf32>
    %101 = vector.broadcast %100 : vector<1x32xf32> to vector<16x32xf32>
    %102 = arith.addf %99, %101 : vector<16x32xf32>
    %cst_29 = arith.constant 0.000000e+00 : f32
    %103 = vector.broadcast %cst_29 : f32 to vector<16x32xf32>
    %104 = arith.maximumf %102, %103 : vector<16x32xf32>
    %c40 = arith.constant 40 : index
    %c0_30 = arith.constant 0 : index
    %105 = vector.load %arg3[%c40, %c0_30] : memref<72x32xf32, #tpu.memory_space<vmem>>, vector<32x32xf32>
    %c64 = arith.constant 64 : index
    %c0_31 = arith.constant 0 : index
    %106 = vector.load %arg4[%c64, %c0_31] : memref<96x8xf32, #tpu.memory_space<vmem>>, vector<32x8xf32>
    %cst_32 = arith.constant dense<0.000000e+00> : vector<16x32xf32>
    %107 = tpu.matmul %104, %105, %cst_32 {dimension_numbers = #tpu.dot_dimension_numbers<[1], [0], [0], [1], [0, 0, 1, 1], [], []>} : vector<16x32xf32>, vector<32x32xf32>, vector<16x32xf32> -> vector<16x32xf32>
    %cst_33 = arith.constant dense<0.000000e+00> : vector<16x8xf32>
    %108 = tpu.matmul %107, %106, %cst_33 {dimension_numbers = #tpu.dot_dimension_numbers<[1], [0], [0], [1], [0, 0, 1, 1], [], []>} : vector<16x32xf32>, vector<32x8xf32>, vector<16x8xf32> -> vector<16x8xf32>
    %109 = vector.extract_strided_slice %108 {offsets = [0, 0], sizes = [16, 4], strides = [1, 1]} : vector<16x8xf32> to vector<16x4xf32>
    %110 = tpu.transpose %109, [1, 0] : vector<16x4xf32> -> vector<4x16xf32>
    %111 = vector.extract_strided_slice %108 {offsets = [0, 4], sizes = [16, 4], strides = [1, 1]} : vector<16x8xf32> to vector<16x4xf32>
    %112 = tpu.transpose %111, [1, 0] : vector<16x4xf32> -> vector<4x16xf32>
    %113 = vector.shape_cast %112 : vector<4x16xf32> to vector<4x16x1xf32>
    %114 = vector.shape_cast %110 : vector<4x16xf32> to vector<4x1x16xf32>
    %115 = vector.broadcast %113 : vector<4x16x1xf32> to vector<4x16x16xf32>
    %116 = vector.broadcast %114 : vector<4x1x16xf32> to vector<4x16x16xf32>
    %117 = arith.addf %115, %116 : vector<4x16x16xf32>
    %cst_34 = arith.constant 2.000000e-01 : f32
    %118 = vector.broadcast %cst_34 : f32 to vector<4x16x16xf32>
    %119 = arith.mulf %118, %117 : vector<4x16x16xf32>
    %120 = arith.maximumf %117, %119 : vector<4x16x16xf32>
    %121 = vector.shape_cast %0 : vector<16x16xf32> to vector<1x16x16xf32>
    %122 = vector.broadcast %121 : vector<1x16x16xf32> to vector<4x16x16xf32>
    %123 = arith.addf %120, %122 : vector<4x16x16xf32>
    %cst_35 = arith.constant dense<0xFF800000> : vector<4x16xf32>
    %124 = vector.multi_reduction <maximumf>, %123, %cst_35 [2] : vector<4x16x16xf32> to vector<4x16xf32>
    %125 = vector.shape_cast %124 : vector<4x16xf32> to vector<4x16x1xf32>
    %126 = vector.broadcast %125 : vector<4x16x1xf32> to vector<4x16x16xf32>
    %127 = arith.subf %123, %126 : vector<4x16x16xf32>
    %128 = math.exp %127 : vector<4x16x16xf32>
    %cst_36 = arith.constant dense<0.000000e+00> : vector<4x16xf32>
    %129 = vector.multi_reduction <add>, %128, %cst_36 [2] : vector<4x16x16xf32> to vector<4x16xf32>
    %130 = vector.shape_cast %129 : vector<4x16xf32> to vector<4x16x1xf32>
    %131 = tpu.reciprocal %130 {approx = true} : vector<4x16x1xf32> -> vector<4x16x1xf32>
    %132 = vector.broadcast %131 : vector<4x16x1xf32> to vector<4x16x16xf32>
    %133 = arith.mulf %128, %132 : vector<4x16x16xf32>
    %134 = vector.extract_strided_slice %133 {offsets = [0, 0, 0], sizes = [1, 16, 16], strides = [1, 1, 1]} : vector<4x16x16xf32> to vector<1x16x16xf32>
    %135 = vector.shape_cast %134 : vector<1x16x16xf32> to vector<16x16xf32>
    %136 = vector.extract_strided_slice %107 {offsets = [0, 0], sizes = [16, 8], strides = [1, 1]} : vector<16x32xf32> to vector<16x8xf32>
    %cst_37 = arith.constant dense<0.000000e+00> : vector<16x8xf32>
    %137 = tpu.matmul %135, %136, %cst_37 {dimension_numbers = #tpu.dot_dimension_numbers<[1], [0], [0], [1], [0, 0, 1, 1], [], []>} : vector<16x16xf32>, vector<16x8xf32>, vector<16x8xf32> -> vector<16x8xf32>
    %138 = vector.extract_strided_slice %133 {offsets = [1, 0, 0], sizes = [1, 16, 16], strides = [1, 1, 1]} : vector<4x16x16xf32> to vector<1x16x16xf32>
    %139 = vector.shape_cast %138 : vector<1x16x16xf32> to vector<16x16xf32>
    %140 = vector.extract_strided_slice %107 {offsets = [0, 8], sizes = [16, 8], strides = [1, 1]} : vector<16x32xf32> to vector<16x8xf32>
    %cst_38 = arith.constant dense<0.000000e+00> : vector<16x8xf32>
    %141 = tpu.matmul %139, %140, %cst_38 {dimension_numbers = #tpu.dot_dimension_numbers<[1], [0], [0], [1], [0, 0, 1, 1], [], []>} : vector<16x16xf32>, vector<16x8xf32>, vector<16x8xf32> -> vector<16x8xf32>
    %142 = vector.extract_strided_slice %133 {offsets = [2, 0, 0], sizes = [1, 16, 16], strides = [1, 1, 1]} : vector<4x16x16xf32> to vector<1x16x16xf32>
    %143 = vector.shape_cast %142 : vector<1x16x16xf32> to vector<16x16xf32>
    %144 = vector.extract_strided_slice %107 {offsets = [0, 16], sizes = [16, 8], strides = [1, 1]} : vector<16x32xf32> to vector<16x8xf32>
    %cst_39 = arith.constant dense<0.000000e+00> : vector<16x8xf32>
    %145 = tpu.matmul %143, %144, %cst_39 {dimension_numbers = #tpu.dot_dimension_numbers<[1], [0], [0], [1], [0, 0, 1, 1], [], []>} : vector<16x16xf32>, vector<16x8xf32>, vector<16x8xf32> -> vector<16x8xf32>
    %146 = vector.extract_strided_slice %133 {offsets = [3, 0, 0], sizes = [1, 16, 16], strides = [1, 1, 1]} : vector<4x16x16xf32> to vector<1x16x16xf32>
    %147 = vector.shape_cast %146 : vector<1x16x16xf32> to vector<16x16xf32>
    %148 = vector.extract_strided_slice %107 {offsets = [0, 24], sizes = [16, 8], strides = [1, 1]} : vector<16x32xf32> to vector<16x8xf32>
    %cst_40 = arith.constant dense<0.000000e+00> : vector<16x8xf32>
    %149 = tpu.matmul %147, %148, %cst_40 {dimension_numbers = #tpu.dot_dimension_numbers<[1], [0], [0], [1], [0, 0, 1, 1], [], []>} : vector<16x16xf32>, vector<16x8xf32>, vector<16x8xf32> -> vector<16x8xf32>
    %150 = tpu.concatenate %137, %141, %145, %149 in 1 : vector<16x8xf32>, vector<16x8xf32>, vector<16x8xf32>, vector<16x8xf32> -> vector<16x32xf32>
    %151 = vector.extract_strided_slice %1 {offsets = [2, 0], sizes = [1, 32], strides = [1, 1]} : vector<3x32xf32> to vector<1x32xf32>
    %152 = vector.broadcast %151 : vector<1x32xf32> to vector<16x32xf32>
    %153 = arith.addf %150, %152 : vector<16x32xf32>
    %c0_41 = arith.constant 0 : index
    %c0_42 = arith.constant 0 : index
    %154 = vector.load %arg6[%c0_41, %c0_42] : memref<32x128xf32, #tpu.memory_space<vmem>>, vector<32x128xf32>
    %cst_43 = arith.constant dense<0.000000e+00> : vector<16x128xf32>
    %155 = tpu.matmul %153, %154, %cst_43 {dimension_numbers = #tpu.dot_dimension_numbers<[1], [0], [0], [1], [0, 0, 1, 1], [], []>} : vector<16x32xf32>, vector<32x128xf32>, vector<16x128xf32> -> vector<16x128xf32>
    %c0_44 = arith.constant 0 : index
    %c0_45 = arith.constant 0 : index
    %156 = vector.load %arg7[%c0_44, %c0_45] : memref<1x128xf32, #tpu.memory_space<vmem>>, vector<1x128xf32>
    %157 = vector.broadcast %156 : vector<1x128xf32> to vector<16x128xf32>
    %158 = arith.addf %155, %157 : vector<16x128xf32>
    %c0_46 = arith.constant 0 : index
    %c0_47 = arith.constant 0 : index
    %159 = vector.load %arg8[%c0_46, %c0_47] : memref<16x128xf32, #tpu.memory_space<vmem>>, vector<16x128xf32>
    tpu.vector_store %arg8[%c0_46, %c0_47], %158 {strides = array<i32>} : memref<16x128xf32, #tpu.memory_space<vmem>>, vector<16x128xf32>,
    return
  }
  func.func @transform_0(%arg0: i32) -> (i32, i32) {
    %c0_i32 = arith.constant 0 : i32
    %c0_i32_0 = arith.constant 0 : i32
    %c0_i32_1 = arith.constant 0 : i32
    return %c0_i32, %c0_i32_0 : i32, i32
  }
  func.func @transform_1(%arg0: i32) -> (i32, i32) {
    %c0_i32 = arith.constant 0 : i32
    %c0_i32_0 = arith.constant 0 : i32
    %c0_i32_1 = arith.constant 0 : i32
    return %c0_i32, %c0_i32_0 : i32, i32
  }
  func.func @transform_2(%arg0: i32) -> (i32, i32) {
    %c0_i32 = arith.constant 0 : i32
    %c0_i32_0 = arith.constant 0 : i32
    %c0_i32_1 = arith.constant 0 : i32
    return %c0_i32, %c0_i32_0 : i32, i32
  }
  func.func @transform_3(%arg0: i32) -> (i32, i32) {
    %c0_i32 = arith.constant 0 : i32
    %c0_i32_0 = arith.constant 0 : i32
    %c0_i32_1 = arith.constant 0 : i32
    return %c0_i32, %c0_i32_0 : i32, i32
  }
  func.func @transform_4(%arg0: i32) -> (i32, i32) {
    %c0_i32 = arith.constant 0 : i32
    %c0_i32_0 = arith.constant 0 : i32
    %c0_i32_1 = arith.constant 0 : i32
    return %c0_i32, %c0_i32_0 : i32, i32
  }
  func.func @transform_5(%arg0: i32) -> (i32, i32) {
    %c0_i32 = arith.constant 0 : i32
    %c0_i32_0 = arith.constant 0 : i32
    %c0_i32_1 = arith.constant 0 : i32
    return %c0_i32, %c0_i32_0 : i32, i32
  }
  func.func @transform_6(%arg0: i32) -> (i32, i32) {
    %c0_i32 = arith.constant 0 : i32
    %c0_i32_0 = arith.constant 0 : i32
    %c0_i32_1 = arith.constant 0 : i32
    return %c0_i32, %c0_i32_0 : i32, i32
  }
  func.func @transform_7(%arg0: i32) -> (i32, i32) {
    %c0_i32 = arith.constant 0 : i32
    %c0_i32_0 = arith.constant 0 : i32
    %c0_i32_1 = arith.constant 0 : i32
    return %c0_i32, %c0_i32_0 : i32, i32
  }
}

</mosaic_0001>

<bundles_post_ra>
// kernel: tpu_custom_call.1
= control target key start
LH: loop header
LB: loop body
LE: loop exit
PB: predicated region body
PF: predicated region fallthrough
CT: control target
= control target key end

     0   :  { %vm37_vm0 = vcmask 64512   ;;  %s3467_s0 = inlined_call_operand.vmem [shape: f32[16,8], index: 0, kind: input, shape index: {}]   ;;  %s3468_s1 = inlined_call_operand.vmem [shape: f32[16,16], index: 1, kind: input, shape index: {}]   ;;  %s3469_s2 = inlined_call_operand.vmem [shape: f32[72,32], index: 2, kind: input, shape index: {}]   ;;  %s3470_s3 = inlined_call_operand.vmem [shape: f32[96,8], index: 3, kind: input, shape index: {}]   ;;  %s3471_s4 = inlined_call_operand.vmem [shape: f32[3,32], index: 4, kind: input, shape index: {}]   ;;  %s3472_s5 = inlined_call_operand.vmem [shape: f32[32,128], index: 5, kind: input, shape index: {}]   ;;  %s3473_s6 = inlined_call_operand.vmem [shape: f32[1,128], index: 6, kind: input, shape index: {}]   ;;  %s3474_s7 = inlined_call_operand.hbm [shape: f32[16,128], index: 7, kind: output, shape index: {}]  }
   0x1   :  { %v32_v0 = vld [vmem:[%s3469_s2] sm:$0xff]  ;;  %v31_v2 = vld [vmem:[%s3467_s0 + $0x8] sm:$0xff]  ;;  %v36_v3 = vld [vmem:[%s3470_s3 + $0x18] sm:$0xff] }
   0x2   :  { %v30_v1 = vld [vmem:[%s3467_s0] sm:$0xff]  ;;  %2760 = vmatprep.subr.mxu0 %v32_v0  ;;  %v35_v4 = vld [vmem:[%s3470_s3 + $0x10] sm:$0xff] }
   0x3   :  { %2762 = vmatprep.mubr.msk.f32.mxu0 %vm37_vm0, %v30_v1 }
   0x4   :  { %12 = vsyncpa [#allocation3], 0  ;;  %2761 = vmatpush3.msra.mxu0 %v32_v0  ;;  %2765 = vmatprep.subr.mxu1 %v36_v3  ;;  %v34_v5 = vld [vmem:[%s3470_s3 + $0x8] sm:$0xff]  ;;  %v33_v6 = vld [vmem:[%s3470_s3] sm:$0xff]  ;;  %vm119_vm1 = vcmask 261120   ;;  %s3047_s14 = smov 124   ;;  %v273_v13 = vlaneseq }
   0x5   :  { %2763 = vmatmul.mubr.msk.f32.vlgmr.msra.gmra.mxu0 %vm37_vm0, %v31_v2  ;;  %2766 = vmatpush3.msra.mxu1 %v36_v3  ;;  %v3048_v29 = vmov 1966171168   ;;  %v3157_v50 = vld [vmem:[%s3468_s1 + $0x8] sm:$0xff]  ;;  %v3162_v54 = vld [vmem:[%s3468_s1] sm:$0xff]  ;;  %vm394_vm2 = vcmask 130048   ;;  %s3049_s19 = smov 120  }
   0x6   :  { %2767 = vmatprep.subr.mxu1 %v35_v4  ;;  %v274_v14 = vshrl.u32 %v273_v13, 7  ;;  %v319_v30 = vunpack.c.l.s4 %v3048_v29  ;;  %s3050_s20 = smov 112   ;;  %s3051_s21 = smov 104   ;;  %vm853_vm3 = vcmask 195584  }
   0x7   :  { %2768 = vmatpush3.msra.mxu1 %v35_v4  ;;  %s3052_s22 = smov 8   ;;  %s3053_s8 = smov 16  }
   0x8   :  { %2769 = vmatprep.subr.mxu1 %v34_v5  ;;  %v3134_v15 = vsub.s32 0, %v274_v14  ;;  %v3137_v18 = vsub.s32 1, %v274_v14  ;;  %v3140_v20 = vsub.s32 2, %v274_v14  ;;  %v3143_v22 = vsub.s32 3, %v274_v14  ;;  %s3054_s12 = smov 24  }
   0x9   :  { %2770 = vmatpush3.msra.mxu1 %v34_v5  ;;  %v320_v32 = vunpack.c.0.s8 %v319_v30 }
   0xa   :  { %2771 = vmatprep.subr.mxu1 %v33_v6 }
   0xb   :  { %2772 = vmatpush3.msra.mxu1 %v33_v6  ;;  %v3146_v34 = vsub.s32 %v320_v32, %v274_v14 }
  0xc5   :  { %v3120_v7 = vpop.f32.mrf.mxu0 }
  0xc6   :  { %2776 = vmatprep.subr.mxu0 %v3120_v7 }
  0xc7   :  { %v3123_v8 = vpop.f32.mrf.mxu0  ;;  %2777 = vmatpush3.msra.mxu0 %v3120_v7 }
  0xc8   :  { %2773 = vmatprep.mubr.msk.f32.mxu1 %vm119_vm1, %v3123_v8  ;;  %2778 = vmatprep.subr.mxu0 %v3123_v8 }
  0xc9   :  { %2774 = vmatmul.mubr.msk.f32.vlgmr.msra.gmra.mxu1 %vm119_vm1, %v3120_v7  ;;  %2779 = vmatpush3.msra.mxu0 %v3123_v8 }
 0x189   :  { %v2775_v9 = vpop.f32.mrf.mxu1 }
 0x18b   :  { %v192_v10 = vpop.f32.mrf.mxu1 }
 0x18c   :  { %235 = vrot.lane.b32.xlu0 %v192_v10, %s3047_s14 }
 0x190   :  { %237 = vrot.lane.b32.xlu0 %v2775_v9, %s3047_s14 }
 0x1fe   :  { %v236_v11 = vpop.permute.xlu0 %235 }
 0x1ff   :  { %241 = vxpose.xlu1.b32.start [1/2] (short) (narrow) %v236_v11, 8 }
 0x202   :  { %v238_v12 = vpop.permute.xlu0 %237 }
 0x203   :  { %242 = vxpose.xlu1.b32.end [2/2] (short) (narrow) %v238_v12, 8 }
 0x27b   :  { %v257_v16 = vpop.trf.xlu1 }
 0x27c   :  { %v276_v17 = vrot.slane %v257_v16, %v3134_v15  ;;  %v287_v19 = vrot.slane %v257_v16, %v3137_v18  ;;  %v298_v21 = vrot.slane %v257_v16, %v3140_v20  ;;  %v309_v23 = vrot.slane %v257_v16, %v3143_v22 }
 0x27e   :  { %282 = vbcast.lane.b32.xlu1 %v276_v17, 264  ;;  %278 = vbcast.lane.b32.xlu0 %v276_v17, 256 }
 0x282   :  { %289 = vbcast.lane.b32.xlu0 %v287_v19, 256 }
 0x286   :  { %293 = vbcast.lane.b32.xlu0 %v287_v19, 264 }
 0x28a   :  { %300 = vbcast.lane.b32.xlu0 %v298_v21, 256 }
 0x28e   :  { %304 = vbcast.lane.b32.xlu0 %v298_v21, 264 }
 0x292   :  { %311 = vbcast.lane.b32.xlu0 %v309_v23, 256 }
 0x296   :  { %315 = vbcast.lane.b32.xlu0 %v309_v23, 264 }
 0x2b4   :  { %201 = vxpose.xlu0.b32.start [1/2] (short) (narrow) %v192_v10, 8 }
 0x2b8   :  { %202 = vxpose.xlu0.b32.end [2/2] (short) (narrow) %v2775_v9, 8 }
 0x2f0   :  { %v279_v24 = vpop.permute.xlu0 %278  ;;  %v283_v42 = vpop.permute.xlu1 %282 }
 0x2f4   :  { %v290_v25 = vpop.permute.xlu0 %289 }
 0x2f8   :  { %v294_v26 = vpop.permute.xlu0 %293 }
 0x2fc   :  { %v301_v27 = vpop.permute.xlu0 %300 }
 0x300   :  { %v305_v28 = vpop.permute.xlu0 %304 }
 0x304   :  { %v312_v31 = vpop.permute.xlu0 %311 }
 0x308   :  { %v316_v33 = vpop.permute.xlu0 %315 }
 0x330   :  { %v217_v35 = vpop.trf.xlu0 }
 0x331   :  { %v324_v36 = vrot.slane %v217_v35, %v3146_v34 }
 0x333   :  { %v325_v37 = vcombine.high %v324_v36, %v324_v36  ;;  %v332_v38 = vrot.slane %v324_v36, %v3146_v34 }
 0x335   :  { %v339_v39 = vrot.slane %v325_v37, %v3146_v34  ;;  %v340_v40 = vcombine.high %v332_v38, %v332_v38  ;;  %v345_v41 = vrot.slane %v332_v38, %v3134_v15 }
 0x337   :  { %v349_v43 = vrot.slane %v339_v39, %v3134_v15  ;;  %v363_v44 = vadd.f32 %v345_v41, %v283_v42  ;;  %v353_v45 = vrot.slane %v340_v40, %v3134_v15  ;;  %v362_v46 = vadd.f32 %v345_v41, %v279_v24 }
 0x338   :  { %v341_v52 = vcombine.high %v339_v39, %v339_v39 }
 0x339   :  { %v371_v47 = vmul.f32 0.2, %v363_v44  ;;  %v364_v48 = vadd.f32 %v349_v43, %v290_v25  ;;  %v365_v49 = vadd.f32 %v349_v43, %v294_v26  ;;  %v370_v51 = vmul.f32 0.2, %v362_v46 }
 0x33a   :  { %v366_v58 = vadd.f32 %v353_v45, %v301_v27  ;;  %v367_v63 = vadd.f32 %v353_v45, %v305_v28  ;;  %v357_v0 = vrot.slane %v341_v52, %v3134_v15 }
 0x33b   :  { %v379_v53 = vmax.f32 %v363_v44, %v371_v47  ;;  %v372_v55 = vmul.f32 0.2, %v364_v48  ;;  %v378_v56 = vmax.f32 %v362_v46, %v370_v51  ;;  %v373_v57 = vmul.f32 0.2, %v365_v49 }
 0x33c   :  { %v374_v4 = vmul.f32 0.2, %v366_v58  ;;  %v375_v5 = vmul.f32 0.2, %v367_v63  ;;  %v368_v11 = vadd.f32 %v357_v0, %v312_v31  ;;  %v369_v12 = vadd.f32 %v357_v0, %v316_v33 }
 0x33d   :  { %v387_v59 = vadd.f32 %v379_v53, %v3157_v50  ;;  %v380_v60 = vmax.f32 %v364_v48, %v372_v55  ;;  %v386_v61 = vadd.f32 %v378_v56, %v3162_v54  ;;  %v381_v3 = vmax.f32 %v365_v49, %v373_v57 }
 0x33e   :  { %v382_v10 = vmax.f32 %v366_v58, %v374_v4  ;;  %v383_v16 = vmax.f32 %v367_v63, %v375_v5  ;;  %v376_v17 = vmul.f32 0.2, %v368_v11  ;;  %v377_v24 = vmul.f32 0.2, %v369_v12 }
 0x33f   :  { %v398_v62 = vsel %vm394_vm2, %v387_v59, -inf  ;;  %v395_v1 = vsel %vm394_vm2, %v386_v61, -inf  ;;  %v388_v2 = vadd.f32 %v380_v60, %v3162_v54  ;;  %v389_v9 = vadd.f32 %v381_v3, %v3157_v50 }
 0x340   :  { %399 = vmax.xlane.f32.xlu0 %v398_v62  ;;  %396 = vmax.xlane.f32.xlu1 %v395_v1  ;;  %v390_v14 = vadd.f32 %v382_v10, %v3162_v54  ;;  %v391_v21 = vadd.f32 %v383_v16, %v3157_v50  ;;  %v384_v23 = vmax.f32 %v368_v11, %v376_v17 }
 0x341   :  { %v401_v6 = vsel %vm394_vm2, %v388_v2, -inf  ;;  %v404_v13 = vsel %vm394_vm2, %v389_v9, -inf  ;;  %v385_v27 = vmax.f32 %v369_v12, %v377_v24 }
 0x342   :  { %v407_v19 = vsel %vm394_vm2, %v390_v14, -inf  ;;  %v410_v25 = vsel %vm394_vm2, %v391_v21, -inf  ;;  %v392_v26 = vadd.f32 %v384_v23, %v3162_v54 }
 0x343   :  { %v393_v29 = vadd.f32 %v385_v27, %v3157_v50 }
 0x344   :  { %402 = vmax.xlane.f32.xlu1 %v401_v6  ;;  %v413_v28 = vsel %vm394_vm2, %v392_v26, -inf }
 0x345   :  { %v416_v30 = vsel %vm394_vm2, %v393_v29, -inf }
 0x348   :  { %405 = vmax.xlane.f32.xlu1 %v404_v13 }
 0x34c   :  { %408 = vmax.xlane.f32.xlu1 %v407_v19 }
 0x350   :  { %411 = vmax.xlane.f32.xlu1 %v410_v25 }
 0x354   :  { %414 = vmax.xlane.f32.xlu1 %v413_v28 }
 0x356   :  { %564 = vrot.lane.b32.xlu0 %v3123_v8, %s3049_s19 }
 0x358   :  { %417 = vmax.xlane.f32.xlu1 %v416_v30 }
 0x369   :  { %566 = vrot.lane.b32.xlu1 %v3120_v7, %s3049_s19 }
 0x36d   :  { %653 = vrot.lane.b32.xlu1 %v3120_v7, %s3050_s20 }
 0x371   :  { %651 = vrot.lane.b32.xlu1 %v3123_v8, %s3050_s20 }
 0x3c9   :  { %v400_v31 = vpop.xlane.xlu0 %399  ;;  %v397_v33 = vpop.xlane.xlu1 %396 }
 0x3ca   :  { %v420_v32 = vsub.f32 %v387_v59, %v400_v31  ;;  %v419_v35 = vsub.f32 %v386_v61, %v397_v33 }
 0x3cc   :  { %v429_v36 = vmul.f32 1.442695, %v420_v32  ;;  %v427_v37 = vmul.f32 1.442695, %v419_v35 }
 0x3cd   :  { %v403_v38 = vpop.xlane.xlu1 %402 }
 0x3ce   :  { %2926 = vpow2.f32 %v427_v37  ;;  %v421_v39 = vsub.f32 %v388_v2, %v403_v38 }
 0x3cf   :  { %2928 = vpow2.f32 %v429_v36 }
 0x3d0   :  { %v431_v40 = vmul.f32 1.442695, %v421_v39 }
 0x3d1   :  { %v406_v41 = vpop.xlane.xlu1 %405 }
 0x3d2   :  { %v422_v42 = vsub.f32 %v389_v9, %v406_v41  ;;  %2930 = vpow2.f32 %v431_v40 }
 0x3d4   :  { %v433_v43 = vmul.f32 1.442695, %v422_v42 }
 0x3d5   :  { %v409_v44 = vpop.xlane.xlu1 %408 }
 0x3d6   :  { %v423_v45 = vsub.f32 %v390_v14, %v409_v44  ;;  %2932 = vpow2.f32 %v433_v43 }
 0x3d8   :  { %v435_v46 = vmul.f32 1.442695, %v423_v45 }
 0x3d9   :  { %v412_v47 = vpop.xlane.xlu1 %411 }
 0x3da   :  { %v424_v48 = vsub.f32 %v391_v21, %v412_v47  ;;  %2934 = vpow2.f32 %v435_v46  ;;  %v565_v21 = vpop.permute.xlu0 %564 }
 0x3db   :  { %v2927_v49 = vpop.eup %2926 }
 0x3dc   :  { %v437_v51 = vmul.f32 1.442695, %v424_v48  ;;  %v443_v52 = vsel %vm394_vm2, %v2927_v49, 0.0  ;;  %v2929_v53 = vpop.eup %2928  ;;  %v867_v48 = vld [vmem:[%s3469_s2 + $0x20] sm:$0xff] }
 0x3dd   :  { %444 = vadd.xlane.f32.xlu1 %v443_v52  ;;  %v415_v55 = vpop.xlane.xlu1 %414  ;;  %v446_v58 = vsel %vm394_vm2, %v2929_v53, 0.0  ;;  %2804 = vmatprep.subr.mxu1 %v867_v48  ;;  %v865_v52 = vld [vmem:[%s3469_s2 + $0x10] sm:$0xff] }
 0x3de   :  { %2936 = vpow2.f32 %v437_v51  ;;  %v425_v56 = vsub.f32 %v392_v26, %v415_v55  ;;  %2805 = vmatpush3.msra.mxu1 %v867_v48  ;;  %v866_v51 = vld [vmem:[%s3469_s2 + $0x18] sm:$0xff] }
 0x3df   :  { %v2931_v59 = vpop.eup %2930  ;;  %2806 = vmatprep.subr.mxu1 %v866_v51 }
 0x3e0   :  { %v439_v57 = vmul.f32 1.442695, %v425_v56  ;;  %v449_v63 = vsel %vm394_vm2, %v2931_v59, 0.0  ;;  %2807 = vmatpush3.msra.mxu1 %v866_v51 }
 0x3e1   :  { %447 = vadd.xlane.f32.xlu1 %v446_v58  ;;  %v418_v60 = vpop.xlane.xlu1 %417  ;;  %2808 = vmatprep.subr.mxu1 %v865_v52  ;;  %v870_v58 = vld [vmem:[%s3470_s3 + $0x30] sm:$0xff] }
 0x3e2   :  { %2938 = vpow2.f32 %v439_v57  ;;  %v426_v61 = vsub.f32 %v393_v29, %v418_v60  ;;  %2809 = vmatpush3.msra.mxu1 %v865_v52  ;;  %v871_v57 = vld [vmem:[%s3470_s3 + $0x38] sm:$0xff] }
 0x3e3   :  { %v2933_v0 = vpop.eup %2932 }
 0x3e4   :  { %v441_v62 = vmul.f32 1.442695, %v426_v61  ;;  %v452_v2 = vsel %vm394_vm2, %v2933_v0, 0.0 }
 0x3e5   :  { %450 = vadd.xlane.f32.xlu1 %v449_v63  ;;  %v567_v1 = vpop.permute.xlu1 %566 }
 0x3e6   :  { %2940 = vpow2.f32 %v441_v62  ;;  %2783 = vmatprep.subr.mxu0 %v567_v1 }
 0x3e7   :  { %v2935_v3 = vpop.eup %2934 }
 0x3e8   :  { %v455_v5 = vsel %vm394_vm2, %v2935_v3, 0.0 }
 0x3e9   :  { %453 = vadd.xlane.f32.xlu1 %v452_v2  ;;  %v654_v13 = vpop.permute.xlu1 %653 }
 0x3eb   :  { %v2937_v4 = vpop.eup %2936 }
 0x3ec   :  { %v458_v6 = vsel %vm394_vm2, %v2937_v4, 0.0 }
 0x3ed   :  { %456 = vadd.xlane.f32.xlu1 %v455_v5  ;;  %459 = vadd.xlane.f32.xlu0 %v458_v6  ;;  %v652_v14 = vpop.permute.xlu1 %651 }
 0x3ef   :  { %v2939_v9 = vpop.eup %2938 }
 0x3f0   :  { %v461_v10 = vsel %vm394_vm2, %v2939_v9, 0.0 }
 0x3f1   :  { %462 = vadd.xlane.f32.xlu1 %v461_v10 }
 0x3f3   :  { %v2941_v11 = vpop.eup %2940 }
 0x3f4   :  { %v464_v12 = vsel %vm394_vm2, %v2941_v11, 0.0 }
 0x3f5   :  { %465 = vadd.xlane.f32.xlu0 %v464_v12 }
 0x402   :  { %738 = vrot.lane.b32.xlu1 %v3123_v8, %s3051_s21 }
 0x40b   :  { %740 = vrot.lane.b32.xlu0 %v3120_v7, %s3051_s21 }
 0x466   :  { %v445_v16 = vpop.xlane.xlu1 %444 }
 0x467   :  { %2942 = vrcp.f32 %v445_v16 }
 0x46a   :  { %v448_v17 = vpop.xlane.xlu1 %447 }
 0x46b   :  { %2944 = vrcp.f32 %v448_v17 }
 0x46e   :  { %v451_v19 = vpop.xlane.xlu1 %450 }
 0x46f   :  { %2946 = vrcp.f32 %v451_v19  ;;  %v869_v19 = vld [vmem:[%s3470_s3 + $0x28] sm:$0xff] }
 0x472   :  { %v454_v23 = vpop.xlane.xlu1 %453 }
 0x473   :  { %2948 = vrcp.f32 %v454_v23 }
 0x474   :  { %v2943_v24 = vpop.eup %2942 }
 0x475   :  { %v475_v25 = vmul.f32 %v2943_v24, %v2927_v49 }
 0x476   :  { %v460_v26 = vpop.xlane.xlu0 %459  ;;  %v457_v27 = vpop.xlane.xlu1 %456 }
 0x477   :  { %2950 = vrcp.f32 %v460_v26  ;;  %2780 = vmatprep.mubr.msk.f32.mxu0 %vm394_vm2, %v475_v25 }
 0x478   :  { %v2945_v8 = vpop.eup %2944  ;;  %2952 = vrcp.f32 %v457_v27 }
 0x479   :  { %v476_v7 = vmul.f32 %v2945_v8, %v2929_v53  ;;  %v864_v53 = vld [vmem:[%s3469_s2 + $0x8] sm:$0xff] }
 0x47a   :  { %v463_v28 = vpop.xlane.xlu1 %462  ;;  %2810 = vmatprep.subr.mxu1 %v864_v53 }
 0x47b   :  { %2954 = vrcp.f32 %v463_v28  ;;  %2781 = vmatmul.mubr.msk.f32.vlgmr.msra.gmra.mxu0 %vm394_vm2, %v476_v7  ;;  %2811 = vmatpush3.msra.mxu1 %v864_v53 }
 0x47c   :  { %v2947_v29 = vpop.eup %2946  ;;  %2784 = vmatpush3.msra.mxu0 %v567_v1 }
 0x47d   :  { %2785 = vmatprep.subr.mxu0 %v565_v21  ;;  %v477_v30 = vmul.f32 %v2947_v29, %v2931_v59 }
 0x47e   :  { %2786 = vmatpush3.msra.mxu0 %v565_v21  ;;  %v466_v31 = vpop.xlane.xlu0 %465  ;;  %v739_v42 = vpop.permute.xlu1 %738  ;;  %v868_v21 = vld [vmem:[%s3470_s3 + $0x20] sm:$0xff] }
 0x47f   :  { %2956 = vrcp.f32 %v466_v31  ;;  %2790 = vmatprep.subr.mxu0 %v654_v13  ;;  %2787 = vmatprep.mubr.msk.f32.mxu0 %vm394_vm2, %v477_v30 }
 0x480   :  { %v2949_v32 = vpop.eup %2948 }
 0x481   :  { %v478_v33 = vmul.f32 %v2949_v32, %v2933_v0  ;;  %v3236_v0 = vld [vmem:[%s3471_s4] sm:$0x7] }
 0x482   :  { %v741_v38 = vpop.permute.xlu0 %740 }
 0x483   :  { %2788 = vmatmul.mubr.msk.f32.vlgmr.msra.gmra.mxu0 %vm394_vm2, %v478_v33 }
 0x484   :  { %v2951_v35 = vpop.eup %2950  ;;  %2791 = vmatpush3.msra.mxu0 %v654_v13 }
 0x485   :  { %v2953_v36 = vpop.eup %2952  ;;  %2792 = vmatprep.subr.mxu0 %v652_v14  ;;  %v480_v37 = vmul.f32 %v2951_v35, %v2937_v4 }
 0x486   :  { %2793 = vmatpush3.msra.mxu0 %v652_v14  ;;  %v479_v39 = vmul.f32 %v2953_v36, %v2935_v3  ;;  %v859_v3 = vrot.slane %v3236_v0, %v3134_v15 }
 0x487   :  { %2797 = vmatprep.subr.mxu0 %v741_v38 }
 0x488   :  { %v2955_v40 = vpop.eup %2954  ;;  %2794 = vmatprep.mubr.msk.f32.mxu0 %vm394_vm2, %v479_v39 }
 0x489   :  { %2795 = vmatmul.mubr.msk.f32.vlgmr.msra.gmra.mxu0 %vm394_vm2, %v480_v37  ;;  %v481_v41 = vmul.f32 %v2955_v40, %v2939_v9 }
 0x48a   :  { %2798 = vmatpush3.msra.mxu0 %v741_v38 }
 0x48b   :  { %2799 = vmatprep.subr.mxu0 %v739_v42  ;;  %2801 = vmatprep.mubr.msk.f32.mxu0 %vm394_vm2, %v481_v41 }
 0x48c   :  { %v2957_v43 = vpop.eup %2956  ;;  %2800 = vmatpush3.msra.mxu0 %v739_v42 }
 0x48d   :  { %v482_v44 = vmul.f32 %v2957_v43, %v2941_v11  ;;  %2815 = vmatprep.subr.mxu0 %v871_v57 }
 0x48f   :  { %2802 = vmatmul.mubr.msk.f32.vlgmr.msra.gmra.mxu0 %vm394_vm2, %v482_v44 }
 0x490   :  { %2816 = vmatpush3.msra.mxu0 %v871_v57 }
 0x491   :  { %2817 = vmatprep.subr.mxu0 %v870_v58 }
 0x492   :  { %2818 = vmatpush3.msra.mxu0 %v870_v58 }
 0x493   :  { %2819 = vmatprep.subr.mxu0 %v869_v19 }
 0x494   :  { %2820 = vmatpush3.msra.mxu0 %v869_v19 }
 0x495   :  { %2821 = vmatprep.subr.mxu0 %v868_v21 }
 0x496   :  { %2822 = vmatpush3.msra.mxu0 %v868_v21 }
 0x53b   :  { %v2782_v45 = vpop.f32.mrf.mxu0 }
 0x53d   :  { %v555_v46 = vpop.f32.mrf.mxu0 }
 0x543   :  { %v2789_v47 = vpop.f32.mrf.mxu0 }
 0x544   :  { %829 = vrot.lane.b32.xlu1 %v2789_v47, %s3052_s22 }
 0x545   :  { %v642_v49 = vpop.f32.mrf.mxu0 }
 0x546   :  { %827 = vrot.lane.b32.xlu0 %v642_v49, %s3052_s22 }
 0x549   :  { %v2796_v55 = vpop.f32.mrf.mxu0 }
 0x54a   :  { %837 = vrot.lane.b32.xlu1 %v2796_v55, %s3053_s8 }
 0x54b   :  { %v729_v56 = vpop.f32.mrf.mxu0 }
 0x54c   :  { %835 = vrot.lane.b32.xlu0 %v729_v56, %s3053_s8 }
 0x54f   :  { %v2803_v59 = vpop.f32.mrf.mxu0 }
 0x550   :  { %845 = vrot.lane.b32.xlu1 %v2803_v59, %s3054_s12 }
 0x551   :  { %v816_v60 = vpop.f32.mrf.mxu0 }
 0x552   :  { %843 = vrot.lane.b32.xlu0 %v816_v60, %s3054_s12 }
 0x5b6   :  { %v830_v61 = vpop.permute.xlu1 %829 }
 0x5b7   :  { %v850_v2 = vsel %vm37_vm0, %v2782_v45, %v830_v61 }
 0x5b8   :  { %v828_v62 = vpop.permute.xlu0 %827 }
 0x5b9   :  { %v849_v6 = vsel %vm37_vm0, %v555_v46, %v828_v62 }
 0x5bc   :  { %v838_v63 = vpop.permute.xlu1 %837 }
 0x5bd   :  { %v852_v4 = vsel %vm394_vm2, %v850_v2, %v838_v63 }
 0x5be   :  { %v836_v1 = vpop.permute.xlu0 %835 }
 0x5bf   :  { %v851_v10 = vsel %vm394_vm2, %v849_v6, %v836_v1 }
 0x5c2   :  { %v846_v5 = vpop.permute.xlu1 %845 }
 0x5c3   :  { %v855_v9 = vsel %vm853_vm3, %v852_v4, %v846_v5 }
 0x5c4   :  { %v844_v11 = vpop.permute.xlu0 %843  ;;  %v861_v12 = vadd.f32 %v859_v3, %v855_v9 }
 0x5c5   :  { %v854_v13 = vsel %vm853_vm3, %v851_v10, %v844_v11 }
 0x5c6   :  { %v860_v14 = vadd.f32 %v859_v3, %v854_v13  ;;  %v863_v17 = vmax.f32 %v861_v12, 0.0 }
 0x5c8   :  { %v862_v16 = vmax.f32 %v860_v14, 0.0 }
 0x5ca   :  { %2812 = vmatprep.mubr.msk.f32.mxu1 %vm119_vm1, %v862_v16 }
 0x5cb   :  { %2813 = vmatmul.mubr.msk.f32.vlgmr.msra.gmra.mxu1 %vm119_vm1, %v863_v17 }
 0x68b   :  { %v3254_v23 = vpop.f32.mrf.mxu1 }
 0x68c   :  { %2826 = vmatprep.subr.mxu1 %v3254_v23 }
 0x68d   :  { %v3257_v24 = vpop.f32.mrf.mxu1  ;;  %2827 = vmatpush3.msra.mxu1 %v3254_v23 }
 0x68e   :  { %2823 = vmatprep.mubr.msk.f32.mxu0 %vm119_vm1, %v3257_v24  ;;  %2828 = vmatprep.subr.mxu1 %v3257_v24 }
 0x68f   :  { %2824 = vmatmul.mubr.msk.f32.vlgmr.msra.gmra.mxu0 %vm119_vm1, %v3254_v23  ;;  %2829 = vmatpush3.msra.mxu1 %v3257_v24 }
 0x74f   :  { %v2825_v25 = vpop.f32.mrf.mxu0 }
 0x750   :  { %1070 = vrot.lane.b32.xlu1 %v2825_v25, %s3047_s14 }
 0x751   :  { %v1025_v26 = vpop.f32.mrf.mxu0 }
 0x752   :  { %1068 = vrot.lane.b32.xlu0 %v1025_v26, %s3047_s14 }
 0x7c2   :  { %v1071_v8 = vpop.permute.xlu1 %1070 }
 0x7c4   :  { %v1069_v27 = vpop.permute.xlu0 %1068 }
 0x7c5   :  { %1074 = vxpose.xlu0.b32.start [1/2] (short) (narrow) %v1069_v27, 8 }
 0x7c9   :  { %1075 = vxpose.xlu0.b32.end [2/2] (short) (narrow) %v1071_v8, 8 }
 0x7cd   :  { %1034 = vxpose.xlu0.b32.start [1/2] (short) (narrow) %v1025_v26, 8 }
 0x7d1   :  { %1035 = vxpose.xlu0.b32.end [2/2] (short) (narrow) %v2825_v25, 8 }
 0x841   :  { %v1090_v7 = vpop.trf.xlu0 }
 0x842   :  { %v1109_v28 = vrot.slane %v1090_v7, %v3134_v15  ;;  %v1120_v29 = vrot.slane %v1090_v7, %v3137_v18  ;;  %v1131_v30 = vrot.slane %v1090_v7, %v3140_v20  ;;  %v1142_v31 = vrot.slane %v1090_v7, %v3143_v22 }
 0x844   :  { %1111 = vbcast.lane.b32.xlu1 %v1109_v28, 256 }
 0x848   :  { %1115 = vbcast.lane.b32.xlu1 %v1109_v28, 264 }
 0x849   :  { %v1050_v32 = vpop.trf.xlu0 }
 0x84a   :  { %v1157_v33 = vrot.slane %v1050_v32, %v3146_v34 }
 0x84c   :  { %1122 = vbcast.lane.b32.xlu1 %v1120_v29, 256  ;;  %v1165_v35 = vrot.slane %v1157_v33, %v3146_v34  ;;  %v1158_v36 = vcombine.high %v1157_v33, %v1157_v33 }
 0x84e   :  { %v1178_v37 = vrot.slane %v1165_v35, %v3134_v15  ;;  %v1172_v40 = vrot.slane %v1158_v36, %v3146_v34  ;;  %v1173_v56 = vcombine.high %v1165_v35, %v1165_v35 }
 0x850   :  { %1126 = vbcast.lane.b32.xlu1 %v1120_v29, 264  ;;  %v1182_v45 = vrot.slane %v1172_v40, %v3134_v15  ;;  %v1186_v62 = vrot.slane %v1173_v56, %v3134_v15  ;;  %v1174_v9 = vcombine.high %v1172_v40, %v1172_v40 }
 0x852   :  { %v1190_v16 = vrot.slane %v1174_v9, %v3134_v15 }
 0x854   :  { %1133 = vbcast.lane.b32.xlu1 %v1131_v30, 256 }
 0x858   :  { %1137 = vbcast.lane.b32.xlu1 %v1131_v30, 264 }
 0x85c   :  { %1144 = vbcast.lane.b32.xlu1 %v1142_v31, 256 }
 0x860   :  { %1148 = vbcast.lane.b32.xlu1 %v1142_v31, 264 }
 0x8b6   :  { %v1112_v38 = vpop.permute.xlu1 %1111 }
 0x8b7   :  { %v1195_v39 = vadd.f32 %v1178_v37, %v1112_v38 }
 0x8b9   :  { %v1203_v41 = vmul.f32 0.2, %v1195_v39 }
 0x8ba   :  { %v1116_v42 = vpop.permute.xlu1 %1115 }
 0x8bb   :  { %v1211_v43 = vmax.f32 %v1195_v39, %v1203_v41  ;;  %v1196_v44 = vadd.f32 %v1178_v37, %v1116_v42 }
 0x8bd   :  { %v1204_v46 = vmul.f32 0.2, %v1196_v44  ;;  %v1219_v47 = vadd.f32 %v1211_v43, %v3162_v54 }
 0x8be   :  { %v1123_v48 = vpop.permute.xlu1 %1122 }
 0x8bf   :  { %v1212_v49 = vmax.f32 %v1196_v44, %v1204_v46  ;;  %v1197_v51 = vadd.f32 %v1182_v45, %v1123_v48  ;;  %v1227_v52 = vsel %vm394_vm2, %v1219_v47, -inf }
 0x8c0   :  { %1228 = vmax.xlane.f32.xlu1 %v1227_v52 }
 0x8c1   :  { %v1205_v53 = vmul.f32 0.2, %v1197_v51  ;;  %v1220_v55 = vadd.f32 %v1212_v49, %v3157_v50 }
 0x8c2   :  { %v1127_v57 = vpop.permute.xlu1 %1126 }
 0x8c3   :  { %v1213_v58 = vmax.f32 %v1197_v51, %v1205_v53  ;;  %v1198_v59 = vadd.f32 %v1182_v45, %v1127_v57  ;;  %v1230_v60 = vsel %vm394_vm2, %v1220_v55, -inf }
 0x8c4   :  { %1231 = vmax.xlane.f32.xlu0 %v1230_v60 }
 0x8c5   :  { %v1206_v61 = vmul.f32 0.2, %v1198_v59  ;;  %v1221_v63 = vadd.f32 %v1213_v58, %v3162_v54 }
 0x8c6   :  { %v1134_v1 = vpop.permute.xlu1 %1133 }
 0x8c7   :  { %v1214_v2 = vmax.f32 %v1198_v59, %v1206_v61  ;;  %v1199_v3 = vadd.f32 %v1186_v62, %v1134_v1  ;;  %v1233_v4 = vsel %vm394_vm2, %v1221_v63, -inf }
 0x8c8   :  { %1234 = vmax.xlane.f32.xlu1 %v1233_v4 }
 0x8c9   :  { %v1207_v5 = vmul.f32 0.2, %v1199_v3  ;;  %v1222_v6 = vadd.f32 %v1214_v2, %v3157_v50 }
 0x8ca   :  { %v1138_v10 = vpop.permute.xlu1 %1137 }
 0x8cb   :  { %v1215_v11 = vmax.f32 %v1199_v3, %v1207_v5  ;;  %v1200_v12 = vadd.f32 %v1186_v62, %v1138_v10  ;;  %v1236_v13 = vsel %vm394_vm2, %v1222_v6, -inf }
 0x8cc   :  { %1237 = vmax.xlane.f32.xlu1 %v1236_v13 }
 0x8cd   :  { %v1208_v14 = vmul.f32 0.2, %v1200_v12  ;;  %v1223_v17 = vadd.f32 %v1215_v11, %v3162_v54 }
 0x8ce   :  { %v1145_v19 = vpop.permute.xlu1 %1144 }
 0x8cf   :  { %v1216_v21 = vmax.f32 %v1200_v12, %v1208_v14  ;;  %v1201_v25 = vadd.f32 %v1190_v16, %v1145_v19  ;;  %v1239_v26 = vsel %vm394_vm2, %v1223_v17, -inf }
 0x8d0   :  { %1240 = vmax.xlane.f32.xlu1 %v1239_v26 }
 0x8d1   :  { %v1209_v27 = vmul.f32 0.2, %v1201_v25  ;;  %v1224_v8 = vadd.f32 %v1216_v21, %v3157_v50 }
 0x8d2   :  { %v1149_v7 = vpop.permute.xlu1 %1148 }
 0x8d3   :  { %v1217_v28 = vmax.f32 %v1201_v25, %v1209_v27  ;;  %v1202_v29 = vadd.f32 %v1190_v16, %v1149_v7  ;;  %v1242_v30 = vsel %vm394_vm2, %v1224_v8, -inf }
 0x8d4   :  { %1243 = vmax.xlane.f32.xlu1 %v1242_v30 }
 0x8d5   :  { %v1210_v31 = vmul.f32 0.2, %v1202_v29  ;;  %v1225_v32 = vadd.f32 %v1217_v28, %v3162_v54 }
 0x8d7   :  { %v1218_v33 = vmax.f32 %v1202_v29, %v1210_v31  ;;  %v1245_v35 = vsel %vm394_vm2, %v1225_v32, -inf }
 0x8d8   :  { %1246 = vmax.xlane.f32.xlu1 %v1245_v35 }
 0x8d9   :  { %v1226_v36 = vadd.f32 %v1218_v33, %v3157_v50 }
 0x8db   :  { %v1248_v37 = vsel %vm394_vm2, %v1226_v36, -inf }
 0x8dc   :  { %1249 = vmax.xlane.f32.xlu0 %v1248_v37 }
 0x8e9   :  { %1398 = vrot.lane.b32.xlu1 %v3254_v23, %s3049_s19 }
 0x8ed   :  { %1485 = vrot.lane.b32.xlu1 %v3254_v23, %s3050_s20 }
 0x8f1   :  { %1572 = vrot.lane.b32.xlu1 %v3254_v23, %s3051_s21 }
 0x8f2   :  { %1396 = vrot.lane.b32.xlu0 %v3257_v24, %s3049_s19 }
 0x949   :  { %v1229_v54 = vpop.xlane.xlu1 %1228 }
 0x94a   :  { %v1251_v38 = vsub.f32 %v1219_v47, %v1229_v54 }
 0x94c   :  { %v1259_v39 = vmul.f32 1.442695, %v1251_v38 }
 0x94d   :  { %v1232_v40 = vpop.xlane.xlu0 %1231 }
 0x94e   :  { %2958 = vpow2.f32 %v1259_v39  ;;  %v1252_v50 = vsub.f32 %v1220_v55, %v1232_v40 }
 0x950   :  { %v1261_v41 = vmul.f32 1.442695, %v1252_v50 }
 0x951   :  { %v1235_v42 = vpop.xlane.xlu1 %1234 }
 0x952   :  { %2960 = vpow2.f32 %v1261_v41  ;;  %v1253_v43 = vsub.f32 %v1221_v63, %v1235_v42 }
 0x954   :  { %v1263_v44 = vmul.f32 1.442695, %v1253_v43 }
 0x955   :  { %v1238_v45 = vpop.xlane.xlu1 %1237 }
 0x956   :  { %2962 = vpow2.f32 %v1263_v44  ;;  %v1254_v46 = vsub.f32 %v1222_v6, %v1238_v45 }
 0x958   :  { %v1265_v48 = vmul.f32 1.442695, %v1254_v46 }
 0x959   :  { %v1241_v49 = vpop.xlane.xlu1 %1240 }
 0x95a   :  { %2964 = vpow2.f32 %v1265_v48  ;;  %v1255_v23 = vsub.f32 %v1223_v17, %v1241_v49 }
 0x95b   :  { %v2959_v51 = vpop.eup %2958 }
 0x95c   :  { %v1267_v52 = vmul.f32 1.442695, %v1255_v23  ;;  %v1275_v47 = vsel %vm394_vm2, %v2959_v51, 0.0 }
 0x95d   :  { %v1244_v53 = vpop.xlane.xlu1 %1243  ;;  %1276 = vadd.xlane.f32.xlu1 %v1275_v47 }
 0x95e   :  { %2966 = vpow2.f32 %v1267_v52  ;;  %v1256_v55 = vsub.f32 %v1224_v8, %v1244_v53  ;;  %v1698_v52 = vld [vmem:[%s3469_s2 + $0x40] sm:$0xff]  ;;  %v1697_v53 = vld [vmem:[%s3469_s2 + $0x38] sm:$0xff] }
 0x95f   :  { %v2961_v56 = vpop.eup %2960 }
 0x960   :  { %v1269_v57 = vmul.f32 1.442695, %v1256_v55  ;;  %v1278_v58 = vsel %vm394_vm2, %v2961_v56, 0.0 }
 0x961   :  { %1279 = vadd.xlane.f32.xlu0 %v1278_v58  ;;  %v1247_v59 = vpop.xlane.xlu1 %1246 }
 0x962   :  { %2968 = vpow2.f32 %v1269_v57  ;;  %v1257_v60 = vsub.f32 %v1225_v32, %v1247_v59  ;;  %v1695_v57 = vld [vmem:[%s3469_s2 + $0x28] sm:$0xff]  ;;  %v1702_v59 = vld [vmem:[%s3470_s3 + $0x58] sm:$0xff] }
 0x963   :  { %v2963_v61 = vpop.eup %2962 }
 0x964   :  { %v1271_v62 = vmul.f32 1.442695, %v1257_v60  ;;  %v1281_v63 = vsel %vm394_vm2, %v2963_v61, 0.0  ;;  %v1701_v60 = vld [vmem:[%s3470_s3 + $0x50] sm:$0xff] }
 0x965   :  { %v1250_v1 = vpop.xlane.xlu0 %1249  ;;  %1282 = vadd.xlane.f32.xlu1 %v1281_v63  ;;  %v1399_v2 = vpop.permute.xlu1 %1398 }
 0x966   :  { %2970 = vpow2.f32 %v1271_v62  ;;  %v1258_v3 = vsub.f32 %v1226_v36, %v1250_v1  ;;  %2833 = vmatprep.subr.mxu0 %v1399_v2 }
 0x967   :  { %v2965_v4 = vpop.eup %2964  ;;  %2834 = vmatpush3.msra.mxu0 %v1399_v2 }
 0x968   :  { %v1273_v5 = vmul.f32 1.442695, %v1258_v3  ;;  %v1284_v6 = vsel %vm394_vm2, %v2965_v4, 0.0 }
 0x969   :  { %1285 = vadd.xlane.f32.xlu0 %v1284_v6  ;;  %v1397_v9 = vpop.permute.xlu0 %1396  ;;  %v1486_v10 = vpop.permute.xlu1 %1485 }
 0x96a   :  { %2972 = vpow2.f32 %v1273_v5  ;;  %2835 = vmatprep.subr.mxu0 %v1397_v9  ;;  %2840 = vmatprep.subr.mxu1 %v1486_v10  ;;  %v1690_v5 = vrot.slane %v3236_v0, %v3137_v18  ;;  %v1700_v0 = vld [vmem:[%s3470_s3 + $0x48] sm:$0xff] }
 0x96b   :  { %v2967_v11 = vpop.eup %2966  ;;  %2836 = vmatpush3.msra.mxu0 %v1397_v9 }
 0x96c   :  { %v1287_v12 = vsel %vm394_vm2, %v2967_v11, 0.0 }
 0x96d   :  { %1288 = vadd.xlane.f32.xlu1 %v1287_v12  ;;  %v1573_v13 = vpop.permute.xlu1 %1572 }
 0x96e   :  { %2847 = vmatprep.subr.mxu0 %v1573_v13 }
 0x96f   :  { %v2969_v14 = vpop.eup %2968 }
 0x970   :  { %v1290_v16 = vsel %vm394_vm2, %v2969_v14, 0.0 }
 0x971   :  { %1291 = vadd.xlane.f32.xlu0 %v1290_v16 }
 0x973   :  { %v2971_v17 = vpop.eup %2970 }
 0x974   :  { %v1293_v19 = vsel %vm394_vm2, %v2971_v17, 0.0 }
 0x975   :  { %1294 = vadd.xlane.f32.xlu1 %v1293_v19 }
 0x977   :  { %v2973_v21 = vpop.eup %2972 }
 0x978   :  { %v1296_v25 = vsel %vm394_vm2, %v2973_v21, 0.0 }
 0x979   :  { %1297 = vadd.xlane.f32.xlu0 %v1296_v25  ;;  %v1699_v25 = vld [vmem:[%s3470_s3 + $0x40] sm:$0xff] }
 0x986   :  { %1570 = vrot.lane.b32.xlu1 %v3257_v24, %s3051_s21 }
 0x98f   :  { %1483 = vrot.lane.b32.xlu0 %v3257_v24, %s3050_s20 }
 0x9e6   :  { %v1277_v26 = vpop.xlane.xlu1 %1276 }
 0x9e7   :  { %2974 = vrcp.f32 %v1277_v26 }
 0x9ea   :  { %v1280_v27 = vpop.xlane.xlu0 %1279 }
 0x9eb   :  { %2976 = vrcp.f32 %v1280_v27 }
 0x9ee   :  { %v1283_v8 = vpop.xlane.xlu1 %1282 }
 0x9ef   :  { %2978 = vrcp.f32 %v1283_v8 }
 0x9f2   :  { %v1286_v7 = vpop.xlane.xlu0 %1285 }
 0x9f3   :  { %2980 = vrcp.f32 %v1286_v7 }
 0x9f4   :  { %v2975_v28 = vpop.eup %2974 }
 0x9f5   :  { %v1307_v29 = vmul.f32 %v2975_v28, %v2959_v51 }
 0x9f6   :  { %v1289_v30 = vpop.xlane.xlu1 %1288 }
 0x9f7   :  { %2982 = vrcp.f32 %v1289_v30  ;;  %2830 = vmatprep.mubr.msk.f32.mxu1 %vm394_vm2, %v1307_v29 }
 0x9f8   :  { %v2977_v31 = vpop.eup %2976 }
 0x9f9   :  { %v1308_v32 = vmul.f32 %v2977_v31, %v2961_v56  ;;  %v1696_v56 = vld [vmem:[%s3469_s2 + $0x30] sm:$0xff] }
 0x9fa   :  { %v1292_v33 = vpop.xlane.xlu0 %1291 }
 0x9fb   :  { %2984 = vrcp.f32 %v1292_v33  ;;  %2831 = vmatmul.mubr.msk.f32.vlgmr.msra.gmra.mxu1 %vm394_vm2, %v1308_v32 }
 0x9fc   :  { %v2979_v24 = vpop.eup %2978  ;;  %2841 = vmatpush3.msra.mxu1 %v1486_v10 }
 0x9fd   :  { %v1309_v35 = vmul.f32 %v2979_v24, %v2963_v61 }
 0x9fe   :  { %v1295_v36 = vpop.xlane.xlu1 %1294 }
 0x9ff   :  { %2986 = vrcp.f32 %v1295_v36  ;;  %2837 = vmatprep.mubr.msk.f32.mxu0 %vm394_vm2, %v1309_v35 }
 0xa00   :  { %v2981_v37 = vpop.eup %2980 }
 0xa01   :  { %v1310_v54 = vmul.f32 %v2981_v37, %v2965_v4 }
 0xa02   :  { %v1298_v38 = vpop.xlane.xlu0 %1297  ;;  %v1571_v39 = vpop.permute.xlu1 %1570 }
 0xa03   :  { %2988 = vrcp.f32 %v1298_v38  ;;  %2838 = vmatmul.mubr.msk.f32.vlgmr.msra.gmra.mxu0 %vm394_vm2, %v1310_v54 }
 0xa04   :  { %v2983_v40 = vpop.eup %2982  ;;  %2848 = vmatpush3.msra.mxu0 %v1573_v13 }
 0xa05   :  { %2849 = vmatprep.subr.mxu0 %v1571_v39  ;;  %v1311_v50 = vmul.f32 %v2983_v40, %v2967_v11 }
 0xa06   :  { %2850 = vmatpush3.msra.mxu0 %v1571_v39  ;;  %v1484_v41 = vpop.permute.xlu0 %1483 }
 0xa07   :  { %2842 = vmatprep.subr.mxu1 %v1484_v41  ;;  %2844 = vmatprep.mubr.msk.f32.mxu1 %vm394_vm2, %v1311_v50 }
 0xa08   :  { %v2985_v42 = vpop.eup %2984  ;;  %2843 = vmatpush3.msra.mxu1 %v1484_v41  ;;  %2865 = vmatprep.subr.mxu0 %v1702_v59 }
 0xa09   :  { %v1312_v43 = vmul.f32 %v2985_v42, %v2969_v14  ;;  %2854 = vmatprep.subr.mxu1 %v1698_v52 }
 0xa0b   :  { %2845 = vmatmul.mubr.msk.f32.vlgmr.msra.gmra.mxu1 %vm394_vm2, %v1312_v43 }
 0xa0c   :  { %v2987_v44 = vpop.eup %2986  ;;  %2855 = vmatpush3.msra.mxu1 %v1698_v52 }
 0xa0d   :  { %v1313_v45 = vmul.f32 %v2987_v44, %v2971_v17  ;;  %2856 = vmatprep.subr.mxu1 %v1697_v53 }
 0xa0e   :  { %2857 = vmatpush3.msra.mxu1 %v1697_v53 }
 0xa0f   :  { %2851 = vmatprep.mubr.msk.f32.mxu0 %vm394_vm2, %v1313_v45  ;;  %2858 = vmatprep.subr.mxu1 %v1696_v56  ;;  %v3022_v45 = vld [vmem:[%s3468_s1] sm:$0xff] }
 0xa10   :  { %v2989_v46 = vpop.eup %2988  ;;  %2859 = vmatpush3.msra.mxu1 %v1696_v56 }
 0xa11   :  { %v1314_v48 = vmul.f32 %v2989_v46, %v2973_v21  ;;  %2860 = vmatprep.subr.mxu1 %v1695_v57 }
 0xa12   :  { %2861 = vmatpush3.msra.mxu1 %v1695_v57 }
 0xa13   :  { %2852 = vmatmul.mubr.msk.f32.vlgmr.msra.gmra.mxu0 %vm394_vm2, %v1314_v48 }
 0xa14   :  { %2866 = vmatpush3.msra.mxu0 %v1702_v59 }
 0xa15   :  { %2867 = vmatprep.subr.mxu0 %v1701_v60 }
 0xa16   :  { %2868 = vmatpush3.msra.mxu0 %v1701_v60 }
 0xa17   :  { %2869 = vmatprep.subr.mxu0 %v1700_v0 }
 0xa18   :  { %2870 = vmatpush3.msra.mxu0 %v1700_v0 }
 0xa19   :  { %2871 = vmatprep.subr.mxu0 %v1699_v25 }
 0xa1a   :  { %2872 = vmatpush3.msra.mxu0 %v1699_v25 }
 0xabb   :  { %v2832_v23 = vpop.f32.mrf.mxu1 }
 0xabd   :  { %v1387_v47 = vpop.f32.mrf.mxu1 }
 0xac3   :  { %v2839_v49 = vpop.f32.mrf.mxu0 }
 0xac4   :  { %1661 = vrot.lane.b32.xlu1 %v2839_v49, %s3052_s22 }
 0xac5   :  { %v1474_v51 = vpop.f32.mrf.mxu0 }
 0xac6   :  { %1659 = vrot.lane.b32.xlu0 %v1474_v51, %s3052_s22 }
 0xacb   :  { %v2846_v55 = vpop.f32.mrf.mxu1 }
 0xacc   :  { %1669 = vrot.lane.b32.xlu1 %v2846_v55, %s3053_s8 }
 0xacd   :  { %v1561_v58 = vpop.f32.mrf.mxu1 }
 0xace   :  { %1667 = vrot.lane.b32.xlu0 %v1561_v58, %s3053_s8 }
 0xad3   :  { %v2853_v61 = vpop.f32.mrf.mxu0 }
 0xad4   :  { %1677 = vrot.lane.b32.xlu1 %v2853_v61, %s3054_s12 }
 0xad5   :  { %v1648_v62 = vpop.f32.mrf.mxu0 }
 0xad6   :  { %1675 = vrot.lane.b32.xlu0 %v1648_v62, %s3054_s12 }
 0xb36   :  { %v1662_v63 = vpop.permute.xlu1 %1661 }
 0xb37   :  { %v1682_v4 = vsel %vm37_vm0, %v2832_v23, %v1662_v63 }
 0xb38   :  { %v1660_v1 = vpop.permute.xlu0 %1659 }
 0xb39   :  { %v1681_v10 = vsel %vm37_vm0, %v1387_v47, %v1660_v1 }
 0xb3e   :  { %v1670_v2 = vpop.permute.xlu1 %1669 }
 0xb3f   :  { %v1684_v6 = vsel %vm394_vm2, %v1682_v4, %v1670_v2 }
 0xb40   :  { %v1668_v3 = vpop.permute.xlu0 %1667 }
 0xb41   :  { %v1683_v12 = vsel %vm394_vm2, %v1681_v10, %v1668_v3 }
 0xb46   :  { %v1678_v9 = vpop.permute.xlu1 %1677 }
 0xb47   :  { %v1686_v11 = vsel %vm853_vm3, %v1684_v6, %v1678_v9 }
 0xb48   :  { %v1676_v13 = vpop.permute.xlu0 %1675  ;;  %v1692_v14 = vadd.f32 %v1690_v5, %v1686_v11 }
 0xb49   :  { %v1685_v16 = vsel %vm853_vm3, %v1683_v12, %v1676_v13 }
 0xb4a   :  { %v1691_v17 = vadd.f32 %v1690_v5, %v1685_v16  ;;  %v1694_v21 = vmax.f32 %v1692_v14, 0.0 }
 0xb4c   :  { %v1693_v19 = vmax.f32 %v1691_v17, 0.0 }
 0xb4e   :  { %2862 = vmatprep.mubr.msk.f32.mxu1 %vm119_vm1, %v1693_v19 }
 0xb4f   :  { %2863 = vmatmul.mubr.msk.f32.vlgmr.msra.gmra.mxu1 %vm119_vm1, %v1694_v21 }
 0xc0f   :  { %v3363_v26 = vpop.f32.mrf.mxu1 }
 0xc10   :  { %2876 = vmatprep.subr.mxu1 %v3363_v26 }
 0xc11   :  { %v3366_v27 = vpop.f32.mrf.mxu1  ;;  %2877 = vmatpush3.msra.mxu1 %v3363_v26 }
 0xc12   :  { %2873 = vmatprep.mubr.msk.f32.mxu0 %vm119_vm1, %v3366_v27  ;;  %2878 = vmatprep.subr.mxu1 %v3366_v27 }
 0xc13   :  { %2874 = vmatmul.mubr.msk.f32.vlgmr.msra.gmra.mxu0 %vm119_vm1, %v3363_v26  ;;  %2879 = vmatpush3.msra.mxu1 %v3366_v27 }
 0xcd3   :  { %v2875_v8 = vpop.f32.mrf.mxu0 }
 0xcd4   :  { %1901 = vrot.lane.b32.xlu1 %v2875_v8, %s3047_s14 }
 0xcd5   :  { %v1856_v7 = vpop.f32.mrf.mxu0 }
 0xcd6   :  { %1899 = vrot.lane.b32.xlu0 %v1856_v7, %s3047_s14 }
 0xd46   :  { %v1902_v29 = vpop.permute.xlu1 %1901 }
 0xd48   :  { %v1900_v28 = vpop.permute.xlu0 %1899 }
 0xd49   :  { %1905 = vxpose.xlu0.b32.start [1/2] (short) (narrow) %v1900_v28, 8 }
 0xd4d   :  { %1906 = vxpose.xlu0.b32.end [2/2] (short) (narrow) %v1902_v29, 8 }
 0xd51   :  { %1865 = vxpose.xlu0.b32.start [1/2] (short) (narrow) %v1856_v7, 8 }
 0xd55   :  { %1866 = vxpose.xlu0.b32.end [2/2] (short) (narrow) %v2875_v8, 8 }
 0xdc5   :  { %v1921_v30 = vpop.trf.xlu0 }
 0xdc6   :  { %v1940_v31 = vrot.slane %v1921_v30, %v3134_v15  ;;  %v1951_v32 = vrot.slane %v1921_v30, %v3137_v18  ;;  %v1962_v33 = vrot.slane %v1921_v30, %v3140_v20  ;;  %v1973_v24 = vrot.slane %v1921_v30, %v3143_v22 }
 0xdc8   :  { %1942 = vbcast.lane.b32.xlu1 %v1940_v31, 256 }
 0xdcc   :  { %1946 = vbcast.lane.b32.xlu1 %v1940_v31, 264 }
 0xdcd   :  { %v1881_v35 = vpop.trf.xlu0 }
 0xdce   :  { %v1988_v36 = vrot.slane %v1881_v35, %v3146_v34 }
 0xdd0   :  { %1953 = vbcast.lane.b32.xlu1 %v1951_v32, 256  ;;  %v1996_v37 = vrot.slane %v1988_v36, %v3146_v34  ;;  %v1989_v54 = vcombine.high %v1988_v36, %v1988_v36 }
 0xdd2   :  { %v2009_v38 = vrot.slane %v1996_v37, %v3134_v15  ;;  %v2003_v40 = vrot.slane %v1989_v54, %v3146_v34  ;;  %v3023_v34 = vld [vmem:[%s3468_s1 + $0x8] sm:$0xff]  ;;  %v2004_v53 = vcombine.high %v1996_v37, %v1996_v37 }
 0xdd4   :  { %1957 = vbcast.lane.b32.xlu1 %v1951_v32, 264  ;;  %v2013_v22 = vrot.slane %v2003_v40, %v3134_v15  ;;  %v2017_v60 = vrot.slane %v2004_v53, %v3134_v15  ;;  %v2005_v5 = vcombine.high %v2003_v40, %v2003_v40 }
 0xdd6   :  { %v2021_v13 = vrot.slane %v2005_v5, %v3134_v15 }
 0xdd8   :  { %1964 = vbcast.lane.b32.xlu1 %v1962_v33, 256 }
 0xddc   :  { %1968 = vbcast.lane.b32.xlu1 %v1962_v33, 264 }
 0xde0   :  { %1975 = vbcast.lane.b32.xlu1 %v1973_v24, 256 }
 0xde4   :  { %1979 = vbcast.lane.b32.xlu1 %v1973_v24, 264 }
 0xe3a   :  { %v1943_v39 = vpop.permute.xlu1 %1942 }
 0xe3b   :  { %v2026_v18 = vadd.f32 %v2009_v38, %v1943_v39 }
 0xe3d   :  { %v2034_v50 = vmul.f32 0.2, %v2026_v18 }
 0xe3e   :  { %v1947_v41 = vpop.permute.xlu1 %1946 }
 0xe3f   :  { %v2042_v42 = vmax.f32 %v2026_v18, %v2034_v50  ;;  %v2027_v43 = vadd.f32 %v2009_v38, %v1947_v41 }
 0xe41   :  { %v2035_v44 = vmul.f32 0.2, %v2027_v43  ;;  %v2050_v46 = vadd.f32 %v3022_v45, %v2042_v42 }
 0xe42   :  { %v1954_v48 = vpop.permute.xlu1 %1953 }
 0xe43   :  { %v2043_v49 = vmax.f32 %v2027_v43, %v2035_v44  ;;  %v2028_v23 = vadd.f32 %v2013_v22, %v1954_v48  ;;  %v2058_v51 = vsel %vm394_vm2, %v2050_v46, -inf }
 0xe44   :  { %2059 = vmax.xlane.f32.xlu1 %v2058_v51 }
 0xe45   :  { %v2036_v52 = vmul.f32 0.2, %v2028_v23  ;;  %v2051_v47 = vadd.f32 %v3023_v34, %v2043_v49 }
 0xe46   :  { %v1958_v55 = vpop.permute.xlu1 %1957 }
 0xe47   :  { %v2044_v56 = vmax.f32 %v2028_v23, %v2036_v52  ;;  %v2029_v57 = vadd.f32 %v2013_v22, %v1958_v55  ;;  %v2061_v58 = vsel %vm394_vm2, %v2051_v47, -inf }
 0xe48   :  { %2062 = vmax.xlane.f32.xlu0 %v2061_v58 }
 0xe49   :  { %v2037_v59 = vmul.f32 0.2, %v2029_v57  ;;  %v2052_v61 = vadd.f32 %v3022_v45, %v2044_v56 }
 0xe4a   :  { %v1965_v62 = vpop.permute.xlu1 %1964 }
 0xe4b   :  { %v2045_v63 = vmax.f32 %v2029_v57, %v2037_v59  ;;  %v2030_v1 = vadd.f32 %v2017_v60, %v1965_v62  ;;  %v2064_v2 = vsel %vm394_vm2, %v2052_v61, -inf }
 0xe4c   :  { %2065 = vmax.xlane.f32.xlu1 %v2064_v2 }
 0xe4d   :  { %v2038_v3 = vmul.f32 0.2, %v2030_v1  ;;  %v2053_v4 = vadd.f32 %v3023_v34, %v2045_v63 }
 0xe4e   :  { %v1969_v6 = vpop.permute.xlu1 %1968 }
 0xe4f   :  { %v2046_v9 = vmax.f32 %v2030_v1, %v2038_v3  ;;  %v2031_v10 = vadd.f32 %v2017_v60, %v1969_v6  ;;  %v2067_v11 = vsel %vm394_vm2, %v2053_v4, -inf }
 0xe50   :  { %2068 = vmax.xlane.f32.xlu1 %v2067_v11 }
 0xe51   :  { %v2039_v12 = vmul.f32 0.2, %v2031_v10  ;;  %v2054_v14 = vadd.f32 %v3022_v45, %v2046_v9 }
 0xe52   :  { %v1976_v16 = vpop.permute.xlu1 %1975 }
 0xe53   :  { %v2047_v17 = vmax.f32 %v2031_v10, %v2039_v12  ;;  %v2032_v19 = vadd.f32 %v2021_v13, %v1976_v16  ;;  %v2070_v21 = vsel %vm394_vm2, %v2054_v14, -inf }
 0xe54   :  { %2071 = vmax.xlane.f32.xlu1 %v2070_v21 }
 0xe55   :  { %v2040_v0 = vmul.f32 0.2, %v2032_v19  ;;  %v2055_v25 = vadd.f32 %v3023_v34, %v2047_v17 }
 0xe56   :  { %v1980_v8 = vpop.permute.xlu1 %1979 }
 0xe57   :  { %v2048_v7 = vmax.f32 %v2032_v19, %v2040_v0  ;;  %v2033_v28 = vadd.f32 %v2021_v13, %v1980_v8  ;;  %v2073_v29 = vsel %vm394_vm2, %v2055_v25, -inf }
 0xe58   :  { %2074 = vmax.xlane.f32.xlu1 %v2073_v29 }
 0xe59   :  { %v2041_v30 = vmul.f32 0.2, %v2033_v28  ;;  %v2056_v31 = vadd.f32 %v3022_v45, %v2048_v7 }
 0xe5b   :  { %v2049_v32 = vmax.f32 %v2033_v28, %v2041_v30  ;;  %v2076_v15 = vsel %vm394_vm2, %v2056_v31, -inf }
 0xe5c   :  { %2077 = vmax.xlane.f32.xlu1 %v2076_v15 }
 0xe5d   :  { %v2057_v33 = vadd.f32 %v3023_v34, %v2049_v32 }
 0xe5f   :  { %v2079_v24 = vsel %vm394_vm2, %v2057_v33, -inf }
 0xe60   :  { %2080 = vmax.xlane.f32.xlu0 %v2079_v24 }
 0xe6d   :  { %2229 = vrot.lane.b32.xlu1 %v3363_v26, %s3049_s19 }
 0xe71   :  { %2316 = vrot.lane.b32.xlu1 %v3363_v26, %s3050_s20 }
 0xe75   :  { %2403 = vrot.lane.b32.xlu1 %v3363_v26, %s3051_s21 }
 0xe76   :  { %2227 = vrot.lane.b32.xlu0 %v3366_v27, %s3049_s19 }
 0xecd   :  { %v2060_v35 = vpop.xlane.xlu1 %2059 }
 0xece   :  { %v2082_v36 = vsub.f32 %v2050_v46, %v2060_v35 }
 0xed0   :  { %v2090_v37 = vmul.f32 1.442695, %v2082_v36 }
 0xed1   :  { %v2063_v54 = vpop.xlane.xlu0 %2062 }
 0xed2   :  { %2990 = vpow2.f32 %v2090_v37  ;;  %v2083_v38 = vsub.f32 %v2051_v47, %v2063_v54 }
 0xed4   :  { %v2092_v39 = vmul.f32 1.442695, %v2083_v38 }
 0xed5   :  { %v2066_v18 = vpop.xlane.xlu1 %2065 }
 0xed6   :  { %2992 = vpow2.f32 %v2092_v39  ;;  %v2084_v40 = vsub.f32 %v2052_v61, %v2066_v18 }
 0xed8   :  { %v2094_v50 = vmul.f32 1.442695, %v2084_v40  ;;  %v2527_v40 = vld [vmem:[%s3472_s5 + $0x18] sm:$0xff] }
 0xed9   :  { %v2069_v41 = vpop.xlane.xlu1 %2068 }
 0xeda   :  { %2994 = vpow2.f32 %v2094_v50  ;;  %v2085_v42 = vsub.f32 %v2053_v4, %v2069_v41 }
 0xedc   :  { %v2096_v43 = vmul.f32 1.442695, %v2085_v42 }
 0xedd   :  { %v2072_v22 = vpop.xlane.xlu1 %2071 }
 0xede   :  { %2996 = vpow2.f32 %v2096_v43  ;;  %v2086_v26 = vsub.f32 %v2054_v14, %v2072_v22  ;;  %v2526_v43 = vld [vmem:[%s3472_s5 + $0x10] sm:$0xff] }
 0xedf   :  { %v2991_v44 = vpop.eup %2990 }
 0xee0   :  { %v2098_v45 = vmul.f32 1.442695, %v2086_v26  ;;  %v2106_v46 = vsel %vm394_vm2, %v2991_v44, 0.0  ;;  %v2525_v26 = vld [vmem:[%s3472_s5 + $0x8] sm:$0xff] }
 0xee1   :  { %v2075_v48 = vpop.xlane.xlu1 %2074  ;;  %2107 = vadd.xlane.f32.xlu1 %v2106_v46 }
 0xee2   :  { %2998 = vpow2.f32 %v2098_v45  ;;  %v2087_v49 = vsub.f32 %v2055_v25, %v2075_v48 }
 0xee3   :  { %v2993_v23 = vpop.eup %2992 }
 0xee4   :  { %v2100_v51 = vmul.f32 1.442695, %v2087_v49  ;;  %v2109_v52 = vsel %vm394_vm2, %v2993_v23, 0.0 }
 0xee5   :  { %2110 = vadd.xlane.f32.xlu0 %v2109_v52  ;;  %v2078_v34 = vpop.xlane.xlu1 %2077 }
 0xee6   :  { %3000 = vpow2.f32 %v2100_v51  ;;  %v2088_v47 = vsub.f32 %v2056_v31, %v2078_v34 }
 0xee7   :  { %v2995_v53 = vpop.eup %2994 }
 0xee8   :  { %v2102_v55 = vmul.f32 1.442695, %v2088_v47  ;;  %v2112_v56 = vsel %vm394_vm2, %v2995_v53, 0.0 }
 0xee9   :  { %v2081_v57 = vpop.xlane.xlu0 %2080  ;;  %2113 = vadd.xlane.f32.xlu1 %v2112_v56  ;;  %v2230_v58 = vpop.permute.xlu1 %2229 }
 0xeea   :  { %3002 = vpow2.f32 %v2102_v55  ;;  %v2089_v59 = vsub.f32 %v2057_v33, %v2081_v57  ;;  %2883 = vmatprep.subr.mxu0 %v2230_v58  ;;  %v3024_v57 = vld [vmem:[%s3471_s4] sm:$0x7]  ;;  %s3055_s4 = smov [#allocation2]  }
 0xeeb   :  { %v2997_v60 = vpop.eup %2996  ;;  %2884 = vmatpush3.msra.mxu0 %v2230_v58  ;;  %v2521_v58 = vrot.slane %v3024_v57, %v3140_v20  ;;  %s2623_s29 = sshll.u32 %s3055_s4, 4  ;;  %s2624_s29 = int_to_ptr.vmem [resolvable:$true] %s2623_s29 }
 0xeec   :  { %v2104_v61 = vmul.f32 1.442695, %v2089_v59  ;;  %v2115_v62 = vsel %vm394_vm2, %v2997_v60, 0.0  ;;  %s3025_s30 = scalar_lea.vmem %s2624_s29, 256  ;;  %p3030_p1 = scmp.lt.s32.totalorder %s2624_s29, %s2624_s29 }
 0xeed   :  { %2116 = vadd.xlane.f32.xlu0 %v2115_v62  ;;  %v2228_v63 = vpop.permute.xlu0 %2227  ;;  %v2317_v1 = vpop.permute.xlu1 %2316  ;;  %p3026_p0 = scmp.ne.s32.totalorder %s2624_s29, %s3025_s30  ;;  %p3031_p2 = scmp.lt.s32.totalorder %s3025_s30, %s3025_s30 }
 0xeee   :  { %3004 = vpow2.f32 %v2104_v61  ;;  %2885 = vmatprep.subr.mxu0 %v2228_v63  ;;  %2890 = vmatprep.subr.mxu1 %v2317_v1 }
 0xeef   :  { %v2999_v2 = vpop.eup %2998  ;;  %2886 = vmatpush3.msra.mxu0 %v2228_v63  ;;  %p3032_p3 = por %p3031_p2, %p3030_p1 }
 0xef0   :  { %v2118_v3 = vsel %vm394_vm2, %v2999_v2, 0.0 }
 0xef1   :  { %2119 = vadd.xlane.f32.xlu1 %v2118_v3  ;;  %v2404_v4 = vpop.permute.xlu1 %2403  ;;  %p3033_p4 = pnand %p3032_p3, %p3026_p0 }
 0xef2   :  { %2897 = vmatprep.subr.mxu0 %v2404_v4 }
 0xef3   :  { %v3001_v5 = vpop.eup %3000 }
 0xef4   :  { %v2121_v6 = vsel %vm394_vm2, %v3001_v5, 0.0 }
 0xef5   :  { %2122 = vadd.xlane.f32.xlu0 %v2121_v6 }
 0xef7   :  { %v3003_v9 = vpop.eup %3002 }
 0xef8   :  { %v2124_v10 = vsel %vm394_vm2, %v3003_v9, 0.0 }
 0xef9   :  { %2125 = vadd.xlane.f32.xlu1 %v2124_v10 }
 0xefb   :  { %v3005_v11 = vpop.eup %3004 }
 0xefc   :  { %v2127_v12 = vsel %vm394_vm2, %v3005_v11, 0.0 }
 0xefd   :  { %2128 = vadd.xlane.f32.xlu0 %v2127_v12 }
 0xf0a   :  { %2401 = vrot.lane.b32.xlu1 %v3366_v27, %s3051_s21 }
 0xf13   :  { %2314 = vrot.lane.b32.xlu0 %v3366_v27, %s3050_s20 }
 0xf6a   :  { %v2108_v13 = vpop.xlane.xlu1 %2107 }
 0xf6b   :  { %3006 = vrcp.f32 %v2108_v13 }
 0xf6e   :  { %v2111_v14 = vpop.xlane.xlu0 %2110 }
 0xf6f   :  { %3008 = vrcp.f32 %v2111_v14 }
 0xf72   :  { %v2114_v16 = vpop.xlane.xlu1 %2113 }
 0xf73   :  { %3010 = vrcp.f32 %v2114_v16 }
 0xf76   :  { %v2117_v17 = vpop.xlane.xlu0 %2116 }
 0xf77   :  { %3012 = vrcp.f32 %v2117_v17 }
 0xf78   :  { %v3007_v19 = vpop.eup %3006 }
 0xf79   :  { %v2138_v21 = vmul.f32 %v3007_v19, %v2991_v44  ;;  %v2524_v44 = vld [vmem:[%s3472_s5] sm:$0xff] }
 0xf7a   :  { %v2120_v0 = vpop.xlane.xlu1 %2119 }
 0xf7b   :  { %3014 = vrcp.f32 %v2120_v0  ;;  %2880 = vmatprep.mubr.msk.f32.mxu1 %vm394_vm2, %v2138_v21 }
 0xf7c   :  { %v3009_v25 = vpop.eup %3008 }
 0xf7d   :  { %v2139_v8 = vmul.f32 %v3009_v25, %v2993_v23 }
 0xf7e   :  { %v2123_v7 = vpop.xlane.xlu0 %2122 }
 0xf7f   :  { %3016 = vrcp.f32 %v2123_v7  ;;  %2881 = vmatmul.mubr.msk.f32.vlgmr.msra.gmra.mxu1 %vm394_vm2, %v2139_v8 }
 0xf80   :  { %v3011_v27 = vpop.eup %3010  ;;  %2891 = vmatpush3.msra.mxu1 %v2317_v1 }
 0xf81   :  { %v2140_v28 = vmul.f32 %v3011_v27, %v2995_v53 }
 0xf82   :  { %v2126_v29 = vpop.xlane.xlu1 %2125 }
 0xf83   :  { %3018 = vrcp.f32 %v2126_v29  ;;  %2887 = vmatprep.mubr.msk.f32.mxu0 %vm394_vm2, %v2140_v28 }
 0xf84   :  { %v3013_v30 = vpop.eup %3012 }
 0xf85   :  { %v2141_v31 = vmul.f32 %v3013_v30, %v2997_v60 }
 0xf86   :  { %v2129_v32 = vpop.xlane.xlu0 %2128  ;;  %v2402_v15 = vpop.permute.xlu1 %2401 }
 0xf87   :  { %3020 = vrcp.f32 %v2129_v32  ;;  %2888 = vmatmul.mubr.msk.f32.vlgmr.msra.gmra.mxu0 %vm394_vm2, %v2141_v31 }
 0xf88   :  { %v3015_v33 = vpop.eup %3014  ;;  %2898 = vmatpush3.msra.mxu0 %v2404_v4 }
 0xf89   :  { %2899 = vmatprep.subr.mxu0 %v2402_v15  ;;  %v2142_v24 = vmul.f32 %v3015_v33, %v2999_v2  ;;  %v2670_v2 = vld [vmem:[%s3473_s6] ss:$0 sm:$0xff] }
 0xf8a   :  { %2900 = vmatpush3.msra.mxu0 %v2402_v15  ;;  %v2315_v35 = vpop.permute.xlu0 %2314 }
 0xf8b   :  { %2892 = vmatprep.subr.mxu1 %v2315_v35  ;;  %2894 = vmatprep.mubr.msk.f32.mxu1 %vm394_vm2, %v2142_v24 }
 0xf8c   :  { %v3017_v36 = vpop.eup %3016  ;;  %2893 = vmatpush3.msra.mxu1 %v2315_v35 }
 0xf8d   :  { %v2143_v37 = vmul.f32 %v3017_v36, %v3001_v5  ;;  %2904 = vmatprep.subr.mxu1 %v2527_v40 }
 0xf8f   :  { %2895 = vmatmul.mubr.msk.f32.vlgmr.msra.gmra.mxu1 %vm394_vm2, %v2143_v37 }
 0xf90   :  { %v3019_v54 = vpop.eup %3018  ;;  %2905 = vmatpush3.msra.mxu1 %v2527_v40 }
 0xf91   :  { %v2144_v38 = vmul.f32 %v3019_v54, %v3003_v9  ;;  %2906 = vmatprep.subr.mxu1 %v2526_v43 }
 0xf92   :  { %2907 = vmatpush3.msra.mxu1 %v2526_v43 }
 0xf93   :  { %2901 = vmatprep.mubr.msk.f32.mxu0 %vm394_vm2, %v2144_v38  ;;  %2908 = vmatprep.subr.mxu1 %v2525_v26 }
 0xf94   :  { %v3021_v39 = vpop.eup %3020  ;;  %2909 = vmatpush3.msra.mxu1 %v2525_v26 }
 0xf95   :  { %v2145_v18 = vmul.f32 %v3021_v39, %v3005_v11  ;;  %2910 = vmatprep.subr.mxu1 %v2524_v44 }
 0xf96   :  { %2911 = vmatpush3.msra.mxu1 %v2524_v44 }
 0xf97   :  { %2902 = vmatmul.mubr.msk.f32.vlgmr.msra.gmra.mxu0 %vm394_vm2, %v2145_v18 }
0x103f   :  { %v2882_v41 = vpop.f32.mrf.mxu1 }
0x1041   :  { %v2218_v22 = vpop.f32.mrf.mxu1 }
0x1047   :  { %v2889_v50 = vpop.f32.mrf.mxu0 }
0x1048   :  { %2492 = vrot.lane.b32.xlu1 %v2889_v50, %s3052_s22 }
0x1049   :  { %v2305_v42 = vpop.f32.mrf.mxu0 }
0x104a   :  { %2490 = vrot.lane.b32.xlu0 %v2305_v42, %s3052_s22 }
0x104f   :  { %v2896_v45 = vpop.f32.mrf.mxu1 }
0x1050   :  { %2500 = vrot.lane.b32.xlu1 %v2896_v45, %s3053_s8 }
0x1051   :  { %v2392_v46 = vpop.f32.mrf.mxu1 }
0x1052   :  { %2498 = vrot.lane.b32.xlu0 %v2392_v46, %s3053_s8 }
0x1057   :  { %v2903_v48 = vpop.f32.mrf.mxu0 }
0x1058   :  { %2508 = vrot.lane.b32.xlu1 %v2903_v48, %s3054_s12 }
0x1059   :  { %v2479_v49 = vpop.f32.mrf.mxu0 }
0x105a   :  { %2506 = vrot.lane.b32.xlu0 %v2479_v49, %s3054_s12 }
0x10ba   :  { %v2493_v23 = vpop.permute.xlu1 %2492 }
0x10bb   :  { %v2513_v47 = vsel %vm37_vm0, %v2882_v41, %v2493_v23 }
0x10bc   :  { %v2491_v51 = vpop.permute.xlu0 %2490 }
0x10bd   :  { %v2512_v55 = vsel %vm37_vm0, %v2218_v22, %v2491_v51 }
0x10c2   :  { %v2501_v52 = vpop.permute.xlu1 %2500 }
0x10c3   :  { %v2515_v56 = vsel %vm394_vm2, %v2513_v47, %v2501_v52 }
0x10c4   :  { %v2499_v34 = vpop.permute.xlu0 %2498 }
0x10c5   :  { %v2514_v59 = vsel %vm394_vm2, %v2512_v55, %v2499_v34 }
0x10ca   :  { %v2509_v53 = vpop.permute.xlu1 %2508 }
0x10cb   :  { %v2517_v60 = vsel %vm853_vm3, %v2515_v56, %v2509_v53 }
0x10cc   :  { %v2507_v61 = vpop.permute.xlu0 %2506  ;;  %v2523_v1 = vadd.f32 %v2521_v58, %v2517_v60 }
0x10cd   :  { %v2516_v62 = vsel %vm853_vm3, %v2514_v59, %v2507_v61 }
0x10ce   :  { %v2522_v63 = vadd.f32 %v2521_v58, %v2516_v62 }
0x10d0   :  { %2912 = vmatprep.mubr.msk.f32.mxu1 %vm119_vm1, %v2522_v63 }
0x10d1   :  { %2913 = vmatmul.mubr.msk.f32.vlgmr.msra.gmra.mxu1 %vm119_vm1, %v2523_v1 }
0x1191   :  { %v2914_v3 = vpop.f32.mrf.mxu1 }
0x1192   :  { %v2613_v20 = vadd.f32 %v2914_v3, %v2670_v2 }
0x1193   :  { %v2607_v4 = vpop.f32.mrf.mxu1 }
0x1194   :  { %2617 = vst [vmem:[#allocation2 + $0x8] sm:$0xff] %v2613_v20  ;;  %v2608_v5 = vadd.f32 %v2670_v2, %v2607_v4 }
0x1196   :  { %2616 = vst [vmem:[#allocation2] sm:$0xff] %v2608_v5 }
0x1197   :  { %3036 = shalt.err (!%p3033_p4)
}
0x1198   :  { %s3056_s9 = smov 128  }
0x1199   :  { %2629 = dma.vmem_to_hbm [thread:$0]  %s2624_s29, 256, %s3474_s7, [#allocation3], %s3056_s9, %s3056_s9, %s3052_s22  }
0x119a   :  { %3045 = dma.done.wait [#allocation3], 256  }
0x119b   :  { %3046 = vsyncadd [#allocation3], 4294967040 }
0x119c   :  { %2633 = vsyncpa [#allocation3], 1 }

</bundles_post_ra>
